<compile_context>
chip_gen: v7x
topology: tpu7x:2x2x1
jax: 0.10.0
libtpu: 0.0.40
codegen_flags: <defaults>
</compile_context>

<pallas_src>
import jax
import jax.numpy as jnp
from jax.experimental import pallas as pl
from jax.experimental.pallas import tpu as pltpu

B = 64                 # batch (fixed by the (64,1,1) bias broadcast, see note)
C = 4                  # input channels of the stub backbones
HW = 16                # spatial size of the stub backbones
HWC = C * HW * HW      # 1024 flattened per-image elements
D = 64                 # fusion feature dim (weight is (64, 64))
N_VIEWS = 2            # frequency view + pixel view
NUM_CLASSES = 2
NEG_INF = -1e30        # lane mask for the padded classifier columns

# Row offsets inside the packed bf16 matrix slab (all multiples of 8).
_OFF_M_FREQ = 0                  # (HWC, D)  pooled+linear folded, frequency
_OFF_M_PIX = HWC                 # (HWC, D)  pooled+linear folded, pixel
_OFF_W = 2 * HWC                 # (D, D)    attention weight
_OFF_FCW = 2 * HWC + D           # (D, D)    fc.weight^T padded to D lanes
MATS_ROWS = 2 * HWC + 2 * D      # 2176

# Rows inside the small f32 vector slab.
_ROW_V = 0          # v^T
_ROW_FREQ_B = 1     # frequency backbone bias
_ROW_PIX_B = 2      # pixel backbone bias
_ROW_CLS = 3        # [fc_b0, fc_b1, -1e30, ..., -1e30]
VECS_ROWS = 8


# ----------------------------------------------------------------------------
# Pallas kernel: backbones + attention fusion + classifier, fully fused.
#   l_view = x_view_flat @ M_view + b_view        (pool folded into M)
#   temp   = tanh([l_freq; l_pix] @ W + bias)     (one 128-row MXU push)
#   f      = sum(temp * v, lanes)                 (VPU + XLU, no MXU)
#   score  = softmax over views
#   u      = l_freq*score_f + l_pix*score_p
#   y      = u @ fc_w^T + fc_b   (padded to 64 lanes, masked with -1e30)
#   p      = softmax(y) over the 2 real classes
# ----------------------------------------------------------------------------
def fusion_kernel(dct_ref, x_ref, mats_ref, vecs_ref, bias_ref, out_ref):
    bf16 = jnp.bfloat16
    f32 = jnp.float32

    # Packed parameter views (all sublane offsets are 8-aligned).
    m_freq = mats_ref[_OFF_M_FREQ:_OFF_M_FREQ + HWC, :]       # (HWC, D) bf16
    m_pix = mats_ref[_OFF_M_PIX:_OFF_M_PIX + HWC, :]          # (HWC, D) bf16
    w_att = mats_ref[_OFF_W:_OFF_W + D, :]                    # (D, D)   bf16
    fcw_t = mats_ref[_OFF_FCW:_OFF_FCW + D, :]                # (D, D)   bf16

    vecs = vecs_ref[...]                                      # (8, D) f32
    v_row = vecs[_ROW_V:_ROW_V + 1, :]                        # (1, D)
    freq_b = vecs[_ROW_FREQ_B:_ROW_FREQ_B + 1, :]             # (1, D)
    pix_b = vecs[_ROW_PIX_B:_ROW_PIX_B + 1, :]                # (1, D)
    cls_b = vecs[_ROW_CLS:_ROW_CLS + 1, :]                    # (1, D)

    # Backbones: mean-pool + linear, folded into a single matmul per view.
    l_freq = jnp.dot(dct_ref[...].astype(bf16), m_freq,
                     preferred_element_type=f32) + freq_b     # (B, D) f32
    l_pix = jnp.dot(x_ref[...].astype(bf16), m_pix,
                    preferred_element_type=f32) + pix_b       # (B, D) f32

    # Stack views along the sublane axis -> one 128-row attention matmul.
    l_stack = jnp.concatenate([l_freq, l_pix], axis=0)        # (2B, D) f32

    temp = jnp.tanh(
        jnp.dot(l_stack.astype(bf16), w_att, preferred_element_type=f32)
        + bias_ref[...])                                      # (2B, D) f32

    # Attention logit per view: VPU multiply + lane reduction (MXU stays free).
    f = jnp.sum(temp * v_row, axis=-1, keepdims=True)         # (2B, 1)
    f_freq = f[0:B, :]
    f_pix = f[B:2 * B, :]

    # Softmax over the view axis.
    f_max = jnp.maximum(f_freq, f_pix)
    e_f = jnp.exp(f_freq - f_max)
    e_p = jnp.exp(f_pix - f_max)
    inv = pl.reciprocal(e_f + e_p, approx=True)               # EUP reciprocal
    u = l_freq * (e_f * inv) + l_pix * (e_p * inv)            # (B, D)

    # Classifier padded to D lanes: cols >= NUM_CLASSES carry -1e30 via cls_b,
    # so a full-lane softmax equals the 2-class softmax.
    y = jnp.dot(u.astype(bf16), fcw_t, preferred_element_type=f32) + cls_b
    y = y - jnp.max(y, axis=-1, keepdims=True)
    ey = jnp.exp(y)
    probs = ey * pl.reciprocal(jnp.sum(ey, axis=-1, keepdims=True), approx=True)

    out_ref[...] = probs[:, 0:NUM_CLASSES].astype(out_ref.dtype)


# ----------------------------------------------------------------------------
# One-time parameter packing (outside the hot path).
# ----------------------------------------------------------------------------
def prepare_params(weight, v, bias, fc_w, fc_b, freq_w, freq_b, pix_w, pix_b):
    pool = 1.0 / float(HW * HW)
    # Fold the (H*W) mean-pool into the backbone weight: M[c*HW*HW + s, d] = w[c, d]/HW^2.
    m_freq = jnp.repeat(freq_w, HW * HW, axis=0) * pool       # (HWC, D)
    m_pix = jnp.repeat(pix_w, HW * HW, axis=0) * pool         # (HWC, D)

    # fc.weight^T padded to D output lanes (zeros beyond the 2 real classes).
    fcw_t_pad = jnp.zeros((D, D), jnp.float32).at[:, :NUM_CLASSES].set(fc_w.T)
    # Class bias row doubles as a -inf mask for the padded lanes.
    cls_row = jnp.full((D,), NEG_INF, jnp.float32).at[:NUM_CLASSES].set(fc_b)

    mats = jnp.concatenate([m_freq, m_pix, weight, fcw_t_pad],
                           axis=0).astype(jnp.bfloat16)       # (MATS_ROWS, D)

    vecs = jnp.zeros((VECS_ROWS, D), jnp.float32)
    vecs = vecs.at[_ROW_V].set(v.reshape(D))
    vecs = vecs.at[_ROW_FREQ_B].set(freq_b)
    vecs = vecs.at[_ROW_PIX_B].set(pix_b)
    vecs = vecs.at[_ROW_CLS].set(cls_row)

    # Per-batch scalar bias, replicated for the two stacked views.
    bias_col = jnp.tile(bias.reshape(B, 1), (N_VIEWS, 1))     # (2B, 1)
    return mats, vecs, bias_col


def fusion_net_forward(x, dct_imgs, mats, vecs, bias_col):
    """x, dct_imgs: (B, C, H, W) f32. Returns softmax probs (B, NUM_CLASSES)."""
    x_flat = x.reshape(B, HWC)          # contiguous reshape: free, lane-dense
    dct_flat = dct_imgs.reshape(B, HWC)

    return pl.pallas_call(
        fusion_kernel,
        out_shape=jax.ShapeDtypeStruct((B, NUM_CLASSES), jnp.float32),
        grid=(1,),
        in_specs=[
            pl.BlockSpec((B, HWC), lambda i: (0, 0)),             # dct (flat)
            pl.BlockSpec((B, HWC), lambda i: (0, 0)),             # x   (flat)
            pl.BlockSpec((MATS_ROWS, D), lambda i: (0, 0)),       # bf16 matrices
            pl.BlockSpec((VECS_ROWS, D), lambda i: (0, 0)),       # f32 vectors
            pl.BlockSpec((N_VIEWS * B, 1), lambda i: (0, 0)),     # per-batch bias
        ],
        out_specs=pl.BlockSpec((B, NUM_CLASSES), lambda i: (0, 0)),
        compiler_params=pltpu.CompilerParams(
            # Single program; if the batch ever grows, grid over it with
            # ("parallel",) to use both TensorCores on v7x.
            dimension_semantics=("arbitrary",)),
    )(dct_flat, x_flat, mats, vecs, bias_col)


# ----------------------------------------------------------------------------
# Pure-JAX reference of the full forward (stub backbones + FusionNet head).
# ----------------------------------------------------------------------------
def reference_forward(x, dct_imgs, weight, v, bias, fc_w, fc_b,
                      freq_w, freq_b, pix_w, pix_b):
    freq_out = jnp.mean(dct_imgs, axis=(2, 3)) @ freq_w + freq_b    # (B, D)
    pix_out = jnp.mean(x, axis=(2, 3)) @ pix_w + pix_b              # (B, D)
    l = jnp.stack([freq_out, pix_out], axis=1)                      # (B, 2, D)
    temp = jnp.tanh(jnp.matmul(l, weight) + bias)     # (B,2,D) + (64,1,1), B=64
    f = jnp.matmul(temp, v)                                         # (B, 2, 1)
    f_score = jax.nn.softmax(f, axis=1)
    u = jnp.sum(l * f_score, axis=1)                                # (B, D)
    y = u @ fc_w.T + fc_b                                           # (B, 2)
    return jax.nn.softmax(y, axis=1)


if __name__ == "__main__":
    key = jax.random.PRNGKey(0)
    ks = jax.random.split(key, 12)

    # Inputs (NCHW, like PyTorch).
    x = jax.random.normal(ks[0], (B, C, HW, HW), jnp.float32)
    dct_imgs = jax.random.normal(ks[1], (B, C, HW, HW), jnp.float32)

    # FusionNet parameters (deterministic init).
    weight = jax.random.uniform(ks[2], (D, D), jnp.float32, -0.1, 0.1)
    v = jax.random.uniform(ks[3], (D, 1), jnp.float32, -0.1, 0.1)
    bias = jax.random.uniform(ks[4], (D, 1, 1), jnp.float32, -0.1, 0.1)
    bound = 1.0 / (D ** 0.5)
    fc_w = jax.random.uniform(ks[5], (NUM_CLASSES, D), jnp.float32, -bound, bound)
    fc_b = jax.random.uniform(ks[6], (NUM_CLASSES,), jnp.float32, -bound, bound)

    # Stub backbone parameters.
    freq_w = jax.random.uniform(ks[7], (C, D), jnp.float32, -0.5, 0.5)
    freq_b = jax.random.uniform(ks[8], (D,), jnp.float32, -0.1, 0.1)
    pix_w = jax.random.uniform(ks[9], (C, D), jnp.float32, -0.5, 0.5)
    pix_b = jax.random.uniform(ks[10], (D,), jnp.float32, -0.1, 0.1)

    # One-time weight packing (not on the per-call hot path).
    mats, vecs, bias_col = prepare_params(weight, v, bias, fc_w, fc_b,
                                          freq_w, freq_b, pix_w, pix_b)

    # ---- fused forward pass (mirrors FusionNet.forward) ----
    p = fusion_net_forward(x, dct_imgs, mats, vecs, bias_col)
    p = jax.block_until_ready(p)

    # Sanity check against the pure-f32 JAX reference. Tolerance accounts for
    # bf16 MXU operands and EUP approximate reciprocals in the kernel.
    p_ref = reference_forward(x, dct_imgs, weight, v, bias, fc_w, fc_b,
                              freq_w, freq_b, pix_w, pix_b)
    assert p.shape == (B, NUM_CLASSES)
    assert bool(jnp.all(jnp.isfinite(p)))
    assert bool(jnp.max(jnp.abs(p - p_ref)) < 1e-2)

    print("KERNEL_OK")
</pallas_src>

<mosaic_0001>
module attributes {stable_mosaic.version = 11 : i64} {
  func.func @fusion_kernel(%arg0: i32, %arg1: memref<64x1024xf32, #tpu.memory_space<vmem>>, %arg2: memref<64x1024xf32, #tpu.memory_space<vmem>>, %arg3: memref<2176x64xbf16, #tpu.memory_space<vmem>>, %arg4: memref<8x64xf32, #tpu.memory_space<vmem>>, %arg5: memref<128x1xf32, #tpu.memory_space<vmem>>, %arg6: memref<64x2xf32, #tpu.memory_space<vmem>>) attributes {dimension_semantics = [#tpu.dimension_semantics<arbitrary>], iteration_bounds = array<i64: 1>, scalar_prefetch = 0 : i64, scratch_operands = 0 : i64, tpu.core_type = #tpu.core_type<tc>, window_params = [{pipeline_mode = #tpu.pipeline_mode<synchronous>, transform_indices = @transform_0, window_bounds = array<i64: 64, 1024>}, {pipeline_mode = #tpu.pipeline_mode<synchronous>, transform_indices = @transform_1, window_bounds = array<i64: 64, 1024>}, {pipeline_mode = #tpu.pipeline_mode<synchronous>, transform_indices = @transform_2, window_bounds = array<i64: 2176, 64>}, {pipeline_mode = #tpu.pipeline_mode<synchronous>, transform_indices = @transform_3, window_bounds = array<i64: 8, 64>}, {pipeline_mode = #tpu.pipeline_mode<synchronous>, transform_indices = @transform_4, window_bounds = array<i64: 128, 1>}, {pipeline_mode = #tpu.pipeline_mode<synchronous>, transform_indices = @transform_5, window_bounds = array<i64: 64, 2>}]} {
    %c0 = arith.constant 0 : index
    %c0_0 = arith.constant 0 : index
    %0 = vector.load %arg3[%c0, %c0_0] : memref<2176x64xbf16, #tpu.memory_space<vmem>>, vector<1024x64xbf16>
    %c1024 = arith.constant 1024 : index
    %c0_1 = arith.constant 0 : index
    %1 = vector.load %arg3[%c1024, %c0_1] : memref<2176x64xbf16, #tpu.memory_space<vmem>>, vector<1024x64xbf16>
    %c2048 = arith.constant 2048 : index
    %c0_2 = arith.constant 0 : index
    %2 = vector.load %arg3[%c2048, %c0_2] : memref<2176x64xbf16, #tpu.memory_space<vmem>>, vector<64x64xbf16>
    %c2112 = arith.constant 2112 : index
    %c0_3 = arith.constant 0 : index
    %3 = vector.load %arg3[%c2112, %c0_3] : memref<2176x64xbf16, #tpu.memory_space<vmem>>, vector<64x64xbf16>
    %c0_4 = arith.constant 0 : index
    %c0_5 = arith.constant 0 : index
    %4 = vector.load %arg4[%c0_4, %c0_5] : memref<8x64xf32, #tpu.memory_space<vmem>>, vector<8x64xf32>
    %5 = vector.extract_strided_slice %4 {offsets = [0, 0], sizes = [1, 64], strides = [1, 1]} : vector<8x64xf32> to vector<1x64xf32>
    %6 = vector.extract_strided_slice %4 {offsets = [1, 0], sizes = [1, 64], strides = [1, 1]} : vector<8x64xf32> to vector<1x64xf32>
    %7 = vector.extract_strided_slice %4 {offsets = [2, 0], sizes = [1, 64], strides = [1, 1]} : vector<8x64xf32> to vector<1x64xf32>
    %8 = vector.extract_strided_slice %4 {offsets = [3, 0], sizes = [1, 64], strides = [1, 1]} : vector<8x64xf32> to vector<1x64xf32>
    %c0_6 = arith.constant 0 : index
    %c0_7 = arith.constant 0 : index
    %9 = vector.load %arg1[%c0_6, %c0_7] : memref<64x1024xf32, #tpu.memory_space<vmem>>, vector<64x1024xf32>
    %10 = arith.truncf %9 : vector<64x1024xf32> to vector<64x1024xbf16>
    %cst = arith.constant dense<0.000000e+00> : vector<64x64xf32>
    %11 = tpu.matmul %10, %0, %cst {dimension_numbers = #tpu.dot_dimension_numbers<[1], [0], [0], [1], [0, 0, 1, 1], [], []>} : vector<64x1024xbf16>, vector<1024x64xbf16>, vector<64x64xf32> -> vector<64x64xf32>
    %12 = vector.broadcast %6 : vector<1x64xf32> to vector<64x64xf32>
    %13 = arith.addf %11, %12 : vector<64x64xf32>
    %c0_8 = arith.constant 0 : index
    %c0_9 = arith.constant 0 : index
    %14 = vector.load %arg2[%c0_8, %c0_9] : memref<64x1024xf32, #tpu.memory_space<vmem>>, vector<64x1024xf32>
    %15 = arith.truncf %14 : vector<64x1024xf32> to vector<64x1024xbf16>
    %cst_10 = arith.constant dense<0.000000e+00> : vector<64x64xf32>
    %16 = tpu.matmul %15, %1, %cst_10 {dimension_numbers = #tpu.dot_dimension_numbers<[1], [0], [0], [1], [0, 0, 1, 1], [], []>} : vector<64x1024xbf16>, vector<1024x64xbf16>, vector<64x64xf32> -> vector<64x64xf32>
    %17 = vector.broadcast %7 : vector<1x64xf32> to vector<64x64xf32>
    %18 = arith.addf %16, %17 : vector<64x64xf32>
    %19 = tpu.concatenate %13, %18 in 0 : vector<64x64xf32>, vector<64x64xf32> -> vector<128x64xf32>
    %20 = arith.truncf %19 : vector<128x64xf32> to vector<128x64xbf16>
    %cst_11 = arith.constant dense<0.000000e+00> : vector<128x64xf32>
    %21 = tpu.matmul %20, %2, %cst_11 {dimension_numbers = #tpu.dot_dimension_numbers<[1], [0], [0], [1], [0, 0, 1, 1], [], []>} : vector<128x64xbf16>, vector<64x64xbf16>, vector<128x64xf32> -> vector<128x64xf32>
    %c0_12 = arith.constant 0 : index
    %c0_13 = arith.constant 0 : index
    %22 = vector.load %arg5[%c0_12, %c0_13] : memref<128x1xf32, #tpu.memory_space<vmem>>, vector<128x1xf32>
    %23 = vector.broadcast %22 : vector<128x1xf32> to vector<128x64xf32>
    %24 = arith.addf %21, %23 : vector<128x64xf32>
    %25 = math.tanh %24 : vector<128x64xf32>
    %26 = vector.broadcast %5 : vector<1x64xf32> to vector<128x64xf32>
    %27 = arith.mulf %25, %26 : vector<128x64xf32>
    %cst_14 = arith.constant dense<0.000000e+00> : vector<128xf32>
    %28 = vector.multi_reduction <add>, %27, %cst_14 [1] : vector<128x64xf32> to vector<128xf32>
    %29 = vector.shape_cast %28 : vector<128xf32> to vector<128x1xf32>
    %30 = vector.extract_strided_slice %29 {offsets = [0, 0], sizes = [64, 1], strides = [1, 1]} : vector<128x1xf32> to vector<64x1xf32>
    %31 = vector.extract_strided_slice %29 {offsets = [64, 0], sizes = [64, 1], strides = [1, 1]} : vector<128x1xf32> to vector<64x1xf32>
    %32 = arith.maximumf %30, %31 : vector<64x1xf32>
    %33 = arith.subf %30, %32 : vector<64x1xf32>
    %34 = math.exp %33 : vector<64x1xf32>
    %35 = arith.subf %31, %32 : vector<64x1xf32>
    %36 = math.exp %35 : vector<64x1xf32>
    %37 = arith.addf %34, %36 : vector<64x1xf32>
    %38 = tpu.reciprocal %37 {approx = true} : vector<64x1xf32> -> vector<64x1xf32>
    %39 = arith.mulf %34, %38 : vector<64x1xf32>
    %40 = vector.broadcast %39 : vector<64x1xf32> to vector<64x64xf32>
    %41 = arith.mulf %13, %40 : vector<64x64xf32>
    %42 = arith.mulf %36, %38 : vector<64x1xf32>
    %43 = vector.broadcast %42 : vector<64x1xf32> to vector<64x64xf32>
    %44 = arith.mulf %18, %43 : vector<64x64xf32>
    %45 = arith.addf %41, %44 : vector<64x64xf32>
    %46 = arith.truncf %45 : vector<64x64xf32> to vector<64x64xbf16>
    %cst_15 = arith.constant dense<0.000000e+00> : vector<64x64xf32>
    %47 = tpu.matmul %46, %3, %cst_15 {dimension_numbers = #tpu.dot_dimension_numbers<[1], [0], [0], [1], [0, 0, 1, 1], [], []>} : vector<64x64xbf16>, vector<64x64xbf16>, vector<64x64xf32> -> vector<64x64xf32>
    %48 = vector.broadcast %8 : vector<1x64xf32> to vector<64x64xf32>
    %49 = arith.addf %47, %48 : vector<64x64xf32>
    %cst_16 = arith.constant dense<0xFF800000> : vector<64xf32>
    %50 = vector.multi_reduction <maximumf>, %49, %cst_16 [1] : vector<64x64xf32> to vector<64xf32>
    %51 = vector.shape_cast %50 : vector<64xf32> to vector<64x1xf32>
    %52 = vector.broadcast %51 : vector<64x1xf32> to vector<64x64xf32>
    %53 = arith.subf %49, %52 : vector<64x64xf32>
    %54 = math.exp %53 : vector<64x64xf32>
    %cst_17 = arith.constant dense<0.000000e+00> : vector<64xf32>
    %55 = vector.multi_reduction <add>, %54, %cst_17 [1] : vector<64x64xf32> to vector<64xf32>
    %56 = vector.shape_cast %55 : vector<64xf32> to vector<64x1xf32>
    %57 = tpu.reciprocal %56 {approx = true} : vector<64x1xf32> -> vector<64x1xf32>
    %58 = vector.broadcast %57 : vector<64x1xf32> to vector<64x64xf32>
    %59 = arith.mulf %54, %58 : vector<64x64xf32>
    %60 = vector.extract_strided_slice %59 {offsets = [0, 0], sizes = [64, 2], strides = [1, 1]} : vector<64x64xf32> to vector<64x2xf32>
    %c0_18 = arith.constant 0 : index
    %c0_19 = arith.constant 0 : index
    %61 = vector.load %arg6[%c0_18, %c0_19] : memref<64x2xf32, #tpu.memory_space<vmem>>, vector<64x2xf32>
    tpu.vector_store %arg6[%c0_18, %c0_19], %60 {strides = array<i32>} : memref<64x2xf32, #tpu.memory_space<vmem>>, vector<64x2xf32>,
    return
  }
  func.func @transform_0(%arg0: i32) -> (i32, i32) {
    %c0_i32 = arith.constant 0 : i32
    %c0_i32_0 = arith.constant 0 : i32
    %c0_i32_1 = arith.constant 0 : i32
    return %c0_i32, %c0_i32_0 : i32, i32
  }
  func.func @transform_1(%arg0: i32) -> (i32, i32) {
    %c0_i32 = arith.constant 0 : i32
    %c0_i32_0 = arith.constant 0 : i32
    %c0_i32_1 = arith.constant 0 : i32
    return %c0_i32, %c0_i32_0 : i32, i32
  }
  func.func @transform_2(%arg0: i32) -> (i32, i32) {
    %c0_i32 = arith.constant 0 : i32
    %c0_i32_0 = arith.constant 0 : i32
    %c0_i32_1 = arith.constant 0 : i32
    return %c0_i32, %c0_i32_0 : i32, i32
  }
  func.func @transform_3(%arg0: i32) -> (i32, i32) {
    %c0_i32 = arith.constant 0 : i32
    %c0_i32_0 = arith.constant 0 : i32
    %c0_i32_1 = arith.constant 0 : i32
    return %c0_i32, %c0_i32_0 : i32, i32
  }
  func.func @transform_4(%arg0: i32) -> (i32, i32) {
    %c0_i32 = arith.constant 0 : i32
    %c0_i32_0 = arith.constant 0 : i32
    %c0_i32_1 = arith.constant 0 : i32
    return %c0_i32, %c0_i32_0 : i32, i32
  }
  func.func @transform_5(%arg0: i32) -> (i32, i32) {
    %c0_i32 = arith.constant 0 : i32
    %c0_i32_0 = arith.constant 0 : i32
    %c0_i32_1 = arith.constant 0 : i32
    return %c0_i32, %c0_i32_0 : i32, i32
  }
}

</mosaic_0001>

<bundles_post_ra>
// kernel: tpu_custom_call.1
= control target key start
LH: loop header
LB: loop body
LE: loop exit
PB: predicated region body
PF: predicated region fallthrough
CT: control target
= control target key end

     0   :  { %vm1910_vm0 = vcmask 523264   ;;  %vm2425_vm1 = vcmask 15360   ;;  %s4329_s2 = inlined_call_operand.vmem [shape: bf16[2176,64], index: 2, kind: input, shape index: {}]   ;;  %s4330_s0 = inlined_call_operand.vmem [shape: f32[64,1024], index: 0, kind: input, shape index: {}]   ;;  %s4331_s1 = inlined_call_operand.vmem [shape: f32[64,1024], index: 1, kind: input, shape index: {}]   ;;  %s4332_s3 = inlined_call_operand.vmem [shape: f32[8,64], index: 3, kind: input, shape index: {}]   ;;  %s4333_s4 = inlined_call_operand.vmem [shape: f32[128,1], index: 4, kind: input, shape index: {}]   ;;  %s4334_s5 = inlined_call_operand.vmem [shape: f32[64,2], index: 5, kind: output, shape index: {}]  }
   0x1   :  { %v2969_v0 = vld [vmem:[%s4329_s2 + $0x40] sm:$0xff]   ;;  %v2973_v4 = vld [vmem:[%s4329_s2 + $0x48] sm:$0xff]   ;;  %v2977_v8 = vld [vmem:[%s4329_s2 + $0x50] sm:$0xff]  }
   0x2   :  { %v2970_v1 = vld [vmem:[%s4329_s2 + $0xc0] sm:$0xff]   ;;  %2586 = vmatprep.subr.bf16.mxu0 %v2969_v0  ;;  %v2974_v5 = vld [vmem:[%s4329_s2 + $0xc8] sm:$0xff]   ;;  %v2978_v9 = vld [vmem:[%s4329_s2 + $0xd0] sm:$0xff]  }
   0x3   :  { %v2971_v2 = vld [vmem:[%s4329_s2] sm:$0xff]   ;;  %2626 = vmatprep.subr.bf16.mxu1 %v2970_v1  ;;  %v2975_v6 = vld [vmem:[%s4329_s2 + $0x8] sm:$0xff]   ;;  %v2979_v10 = vld [vmem:[%s4329_s2 + $0x10] sm:$0xff]  }
   0x4   :  { %v2972_v3 = vld [vmem:[%s4329_s2 + $0x80] sm:$0xff]   ;;  %2587 = vmatpush3.bf16.msra.mxu0 %v2971_v2  ;;  %v2976_v7 = vld [vmem:[%s4329_s2 + $0x88] sm:$0xff]   ;;  %v2980_v11 = vld [vmem:[%s4329_s2 + $0x90] sm:$0xff]  }
   0x5   :  { %2627 = vmatpush3.bf16.msra.mxu1 %v2972_v3  ;;  %2588 = vmatprep.subr.bf16.mxu0 %v2973_v4  ;;  %v2981_v12 = vld [vmem:[%s4329_s2 + $0x58] sm:$0xff]   ;;  %v2985_v16 = vld [vmem:[%s4329_s2 + $0x60] sm:$0xff]   ;;  %v2989_v20 = vld [vmem:[%s4329_s2 + $0x68] sm:$0xff]  }
   0x6   :  { %2628 = vmatprep.subr.bf16.mxu1 %v2974_v5  ;;  %v2982_v13 = vld [vmem:[%s4329_s2 + $0xd8] sm:$0xff]   ;;  %v2986_v17 = vld [vmem:[%s4329_s2 + $0xe0] sm:$0xff]   ;;  %v2990_v21 = vld [vmem:[%s4329_s2 + $0xe8] sm:$0xff]  }
   0x7   :  { %v2983_v14 = vld [vmem:[%s4329_s2 + $0x18] sm:$0xff]   ;;  %v2987_v18 = vld [vmem:[%s4329_s2 + $0x20] sm:$0xff]   ;;  %v2991_v22 = vld [vmem:[%s4329_s2 + $0x28] sm:$0xff]  }
   0x8   :  { %2589 = vmatpush3.bf16.msra.mxu0 %v2975_v6  ;;  %v2984_v15 = vld [vmem:[%s4329_s2 + $0x98] sm:$0xff]   ;;  %v2988_v19 = vld [vmem:[%s4329_s2 + $0xa0] sm:$0xff]   ;;  %v2992_v23 = vld [vmem:[%s4329_s2 + $0xa8] sm:$0xff]  }
   0x9   :  { %2629 = vmatpush3.bf16.msra.mxu1 %v2976_v7  ;;  %2590 = vmatprep.subr.bf16.mxu0 %v2977_v8  ;;  %v2993_v24 = vld [vmem:[%s4329_s2 + $0x70] sm:$0xff]   ;;  %v2997_v28 = vld [vmem:[%s4329_s2 + $0x78] sm:$0xff]   ;;  %v295_v32 = vld [vmem:[%s4330_s0 + $0x8] sm:$0xff] }
   0xa   :  { %2630 = vmatprep.subr.bf16.mxu1 %v2978_v9  ;;  %v2994_v25 = vld [vmem:[%s4329_s2 + $0xf0] sm:$0xff]   ;;  %v2998_v29 = vld [vmem:[%s4329_s2 + $0xf8] sm:$0xff]   ;;  %v303_v33 = vld [vmem:[%s4330_s0 + $0x48] sm:$0xff] }
   0xb   :  { %v2995_v26 = vld [vmem:[%s4329_s2 + $0x30] sm:$0xff]   ;;  %v2999_v30 = vld [vmem:[%s4329_s2 + $0x38] sm:$0xff]   ;;  %v359_v35 = vpack.c.bf16 %v303_v33, %v295_v32  ;;  %v294_v37 = vld [vmem:[%s4330_s0] sm:$0xff] }
   0xc   :  { %2591 = vmatpush3.bf16.msra.mxu0 %v2979_v10  ;;  %v2996_v27 = vld [vmem:[%s4329_s2 + $0xb0] sm:$0xff]   ;;  %v3000_v31 = vld [vmem:[%s4329_s2 + $0xb8] sm:$0xff]   ;;  %v302_v38 = vld [vmem:[%s4330_s0 + $0x40] sm:$0xff] }
   0xd   :  { %2631 = vmatpush3.bf16.msra.mxu1 %v2980_v11  ;;  %2592 = vmatprep.subr.bf16.mxu0 %v2981_v12  ;;  %v297_v34 = vld [vmem:[%s4330_s0 + $0x18] sm:$0xff]  ;;  %v358_v40 = vpack.c.bf16 %v302_v38, %v294_v37  ;;  %v296_v41 = vld [vmem:[%s4330_s0 + $0x10] sm:$0xff]  ;;  %v3001_v44 = vld [vmem:[%s4329_s2 + $0x140] sm:$0xff]  }
   0xe   :  { %2632 = vmatprep.subr.bf16.mxu1 %v2982_v13  ;;  %v305_v36 = vld [vmem:[%s4330_s0 + $0x58] sm:$0xff]  ;;  %v304_v42 = vld [vmem:[%s4330_s0 + $0x50] sm:$0xff]  ;;  %810 = vmatprep.mubr.bf16.mxu0 %v359_v35  ;;  %v3002_v45 = vld [vmem:[%s4329_s2 + $0x1c0] sm:$0xff]  }
   0xf   :  { %v361_v39 = vpack.c.bf16 %v305_v36, %v297_v34  ;;  %v360_v43 = vpack.c.bf16 %v304_v42, %v296_v41  ;;  %v3003_v46 = vld [vmem:[%s4329_s2 + $0x100] sm:$0xff]   ;;  %v3005_v48 = vld [vmem:[%s4329_s2 + $0x148] sm:$0xff]   ;;  %v313_v54 = vld [vmem:[%s4330_s0 + $0x98] sm:$0xff] }
  0x10   :  { %2593 = vmatpush3.bf16.msra.mxu0 %v2983_v14  ;;  %v3004_v47 = vld [vmem:[%s4329_s2 + $0x180] sm:$0xff]   ;;  %v3006_v49 = vld [vmem:[%s4329_s2 + $0x1c8] sm:$0xff]   ;;  %v321_v55 = vld [vmem:[%s4330_s0 + $0xd8] sm:$0xff] }
  0x11   :  { %2633 = vmatpush3.bf16.msra.mxu1 %v2984_v15  ;;  %2594 = vmatprep.subr.bf16.mxu0 %v2985_v16  ;;  %v3007_v50 = vld [vmem:[%s4329_s2 + $0x108] sm:$0xff]   ;;  %v369_v57 = vpack.c.bf16 %v321_v55, %v313_v54  ;;  %v310_v58 = vld [vmem:[%s4330_s0 + $0x80] sm:$0xff]  ;;  %v312_v60 = vld [vmem:[%s4330_s0 + $0x90] sm:$0xff] }
  0x12   :  { %2634 = vmatprep.subr.bf16.mxu1 %v2986_v17  ;;  %875 = vmatprep.mubr.bf16.mxu1 %v361_v39  ;;  %v3008_v51 = vld [vmem:[%s4329_s2 + $0x188] sm:$0xff]   ;;  %v318_v59 = vld [vmem:[%s4330_s0 + $0xc0] sm:$0xff]  ;;  %v320_v62 = vld [vmem:[%s4330_s0 + $0xd0] sm:$0xff] }
  0x13   :  { %v311_v52 = vld [vmem:[%s4330_s0 + $0x88] sm:$0xff]  ;;  %v366_v61 = vpack.c.bf16 %v318_v59, %v310_v58  ;;  %v368_v63 = vpack.c.bf16 %v320_v62, %v312_v60  ;;  %v3009_v0 = vld [vmem:[%s4329_s2 + $0x150] sm:$0xff]   ;;  %v3013_v4 = vld [vmem:[%s4329_s2 + $0x158] sm:$0xff]  }
  0x14   :  { %2595 = vmatpush3.bf16.msra.mxu0 %v2987_v18  ;;  %v319_v53 = vld [vmem:[%s4330_s0 + $0xc8] sm:$0xff]  ;;  %v3010_v1 = vld [vmem:[%s4329_s2 + $0x1d0] sm:$0xff]   ;;  %v3014_v5 = vld [vmem:[%s4329_s2 + $0x1d8] sm:$0xff]  }
  0x15   :  { %2635 = vmatpush3.bf16.msra.mxu1 %v2988_v19  ;;  %2596 = vmatprep.subr.bf16.mxu0 %v2989_v20  ;;  %v367_v56 = vpack.c.bf16 %v319_v53, %v311_v52  ;;  %v3011_v2 = vld [vmem:[%s4329_s2 + $0x110] sm:$0xff]   ;;  %v3015_v6 = vld [vmem:[%s4329_s2 + $0x118] sm:$0xff]   ;;  %v327_v8 = vld [vmem:[%s4330_s0 + $0x108] sm:$0xff] }
  0x16   :  { %2636 = vmatprep.subr.bf16.mxu1 %v2990_v21  ;;  %v3012_v3 = vld [vmem:[%s4329_s2 + $0x190] sm:$0xff]   ;;  %v3016_v7 = vld [vmem:[%s4329_s2 + $0x198] sm:$0xff]   ;;  %v335_v9 = vld [vmem:[%s4330_s0 + $0x148] sm:$0xff] }
  0x17   :  { %v375_v10 = vpack.c.bf16 %v335_v9, %v327_v8  ;;  %v329_v11 = vld [vmem:[%s4330_s0 + $0x118] sm:$0xff]  ;;  %v326_v13 = vld [vmem:[%s4330_s0 + $0x100] sm:$0xff]  ;;  %v328_v16 = vld [vmem:[%s4330_s0 + $0x110] sm:$0xff] }
  0x18   :  { %2597 = vmatpush3.bf16.msra.mxu0 %v2991_v22  ;;  %v337_v12 = vld [vmem:[%s4330_s0 + $0x158] sm:$0xff]  ;;  %v334_v15 = vld [vmem:[%s4330_s0 + $0x140] sm:$0xff]  ;;  %v336_v17 = vld [vmem:[%s4330_s0 + $0x150] sm:$0xff] }
  0x19   :  { %2637 = vmatpush3.bf16.msra.mxu1 %v2992_v23  ;;  %2598 = vmatprep.subr.bf16.mxu0 %v2993_v24  ;;  %v377_v14 = vpack.c.bf16 %v337_v12, %v329_v11  ;;  %v374_v18 = vpack.c.bf16 %v334_v15, %v326_v13  ;;  %v376_v19 = vpack.c.bf16 %v336_v17, %v328_v16  ;;  %v3017_v20 = vld [vmem:[%s4329_s2 + $0x160] sm:$0xff]   ;;  %v3021_v24 = vld [vmem:[%s4329_s2 + $0x168] sm:$0xff]   ;;  %v353_v32 = vld [vmem:[%s4330_s0 + $0x1d8] sm:$0xff] }
  0x1a   :  { %2638 = vmatprep.subr.bf16.mxu1 %v2994_v25  ;;  %v3018_v21 = vld [vmem:[%s4329_s2 + $0x1e0] sm:$0xff]   ;;  %v3022_v25 = vld [vmem:[%s4329_s2 + $0x1e8] sm:$0xff]   ;;  %v344_v37 = vld [vmem:[%s4330_s0 + $0x190] sm:$0xff] }
  0x1b   :  { %v3019_v22 = vld [vmem:[%s4329_s2 + $0x120] sm:$0xff]   ;;  %v352_v38 = vld [vmem:[%s4330_s0 + $0x1d0] sm:$0xff]  ;;  %v325_v8 = vld [vmem:[%s4330_s0 + $0xf8] sm:$0xff] }
  0x1c   :  { %2599 = vmatpush3.bf16.msra.mxu0 %v2995_v26  ;;  %v3020_v23 = vld [vmem:[%s4329_s2 + $0x1a0] sm:$0xff]   ;;  %v3023_v26 = vld [vmem:[%s4329_s2 + $0x128] sm:$0xff]   ;;  %v384_v39 = vpack.c.bf16 %v352_v38, %v344_v37  ;;  %v3026_v41 = vld [vmem:[%s4329_s2 + $0x1f0] sm:$0xff]  }
  0x1d   :  { %2639 = vmatpush3.bf16.msra.mxu1 %v2996_v27  ;;  %2600 = vmatprep.subr.bf16.mxu0 %v2997_v28  ;;  %v3024_v27 = vld [vmem:[%s4329_s2 + $0x1a8] sm:$0xff]   ;;  %v342_v33 = vld [vmem:[%s4330_s0 + $0x180] sm:$0xff]  ;;  %v3027_v42 = vld [vmem:[%s4329_s2 + $0x130] sm:$0xff]  }
  0x1e   :  { %2640 = vmatprep.subr.bf16.mxu1 %v2998_v29  ;;  %v343_v28 = vld [vmem:[%s4330_s0 + $0x188] sm:$0xff]  ;;  %v350_v34 = vld [vmem:[%s4330_s0 + $0x1c0] sm:$0xff]  ;;  %v308_v58 = vld [vmem:[%s4330_s0 + $0x70] sm:$0xff] }
  0x1f   :  { %v351_v29 = vld [vmem:[%s4330_s0 + $0x1c8] sm:$0xff]  ;;  %v382_v36 = vpack.c.bf16 %v350_v34, %v342_v33  ;;  %v298_v54 = vld [vmem:[%s4330_s0 + $0x20] sm:$0xff]  ;;  %v316_v12 = vld [vmem:[%s4330_s0 + $0xb0] sm:$0xff] }
  0x20   :  { %2601 = vmatpush3.bf16.msra.mxu0 %v2999_v30  ;;  %v345_v30 = vld [vmem:[%s4330_s0 + $0x198] sm:$0xff]  ;;  %v306_v55 = vld [vmem:[%s4330_s0 + $0x60] sm:$0xff]  ;;  %v324_v13 = vld [vmem:[%s4330_s0 + $0xf0] sm:$0xff] }
  0x21   :  { %2641 = vmatpush3.bf16.msra.mxu1 %v3000_v31  ;;  %2666 = vmatprep.subr.bf16.mxu0 %v3001_v44  ;;  %v383_v31 = vpack.c.bf16 %v351_v29, %v343_v28  ;;  %v385_v35 = vpack.c.bf16 %v353_v32, %v345_v30  ;;  %v3029_v44 = vld [vmem:[%s4329_s2 + $0x178] sm:$0xff]   ;;  %v3033_v60 = vld [vmem:[%s4329_s2 + $0x240] sm:$0xff]   ;;  %v372_v15 = vpack.c.bf16 %v324_v13, %v316_v12  ;;  %v3041_v16 = vld [vmem:[%s4329_s2 + $0x250] sm:$0xff]  }
  0x22   :  { %2706 = vmatprep.subr.bf16.mxu1 %v3002_v45  ;;  %v3030_v45 = vld [vmem:[%s4329_s2 + $0x1f8] sm:$0xff]   ;;  %v3035_v62 = vld [vmem:[%s4329_s2 + $0x200] sm:$0xff]   ;;  %v3042_v17 = vld [vmem:[%s4329_s2 + $0x2d0] sm:$0xff]  }
  0x23   :  { %811 = vmatmul.mubr.bf16.vlgmr.msra.gmra.mrb[0].mxu0 %v358_v40  ;;  %v3025_v40 = vld [vmem:[%s4329_s2 + $0x170] sm:$0xff]   ;;  %v314_v9 = vld [vmem:[%s4330_s0 + $0xa0] sm:$0xff]  ;;  %v341_v28 = vld [vmem:[%s4330_s0 + $0x178] sm:$0xff] }
  0x24   :  { %876 = vmatmul.mubr.bf16.vlgmr.msra.gmra.mrb[0].mxu1 %v360_v43  ;;  %2667 = vmatpush3.bf16.msra.mxu0 %v3003_v46  ;;  %v3028_v43 = vld [vmem:[%s4329_s2 + $0x1b0] sm:$0xff]   ;;  %v3031_v46 = vld [vmem:[%s4329_s2 + $0x138] sm:$0xff]   ;;  %v322_v11 = vld [vmem:[%s4330_s0 + $0xe0] sm:$0xff] }
  0x25   :  { %2707 = vmatpush3.bf16.msra.mxu1 %v3004_v47  ;;  %2668 = vmatprep.subr.bf16.mxu0 %v3005_v48  ;;  %v3032_v47 = vld [vmem:[%s4329_s2 + $0x1b8] sm:$0xff]   ;;  %v299_v48 = vld [vmem:[%s4330_s0 + $0x28] sm:$0xff]  ;;  %v330_v29 = vld [vmem:[%s4330_s0 + $0x120] sm:$0xff] }
  0x26   :  { %2708 = vmatprep.subr.bf16.mxu1 %v3006_v49  ;;  %818 = vmatprep.mubr.bf16.mxu0 %v367_v56  ;;  %v307_v49 = vld [vmem:[%s4330_s0 + $0x68] sm:$0xff]  ;;  %v300_v56 = vld [vmem:[%s4330_s0 + $0x30] sm:$0xff]  ;;  %v338_v30 = vld [vmem:[%s4330_s0 + $0x160] sm:$0xff] }
  0x27   :  { %883 = vmatprep.mubr.bf16.mxu1 %v369_v57  ;;  %v363_v52 = vpack.c.bf16 %v307_v49, %v299_v48  ;;  %v362_v57 = vpack.c.bf16 %v306_v55, %v298_v54  ;;  %v364_v59 = vpack.c.bf16 %v308_v58, %v300_v56  ;;  %v378_v32 = vpack.c.bf16 %v338_v30, %v330_v29  ;;  %v332_v33 = vld [vmem:[%s4330_s0 + $0x130] sm:$0xff]  ;;  %v3050_v37 = vld [vmem:[%s4329_s2 + $0x2e0] sm:$0xff]  }
  0x28   :  { %2669 = vmatpush3.bf16.msra.mxu0 %v3007_v50  ;;  %v301_v50 = vld [vmem:[%s4330_s0 + $0x38] sm:$0xff]  ;;  %v340_v34 = vld [vmem:[%s4330_s0 + $0x170] sm:$0xff]  ;;  %v3051_v38 = vld [vmem:[%s4329_s2 + $0x220] sm:$0xff]  }
  0x29   :  { %2709 = vmatpush3.bf16.msra.mxu1 %v3008_v51  ;;  %2670 = vmatprep.subr.bf16.mxu0 %v3009_v0  ;;  %v309_v51 = vld [vmem:[%s4330_s0 + $0x78] sm:$0xff]  ;;  %v3037_v0 = vld [vmem:[%s4329_s2 + $0x248] sm:$0xff]   ;;  %v356_v54 = vld [vmem:[%s4330_s0 + $0x1f0] sm:$0xff] }
  0x2a   :  { %2710 = vmatprep.subr.bf16.mxu1 %v3010_v1  ;;  %v365_v53 = vpack.c.bf16 %v309_v51, %v301_v50  ;;  %v3038_v1 = vld [vmem:[%s4329_s2 + $0x2c8] sm:$0xff]   ;;  %v346_v50 = vld [vmem:[%s4330_s0 + $0x1a0] sm:$0xff]  ;;  %v3057_v56 = vld [vmem:[%s4329_s2 + $0x270] sm:$0xff]  }
  0x2b   :  { %819 = vmatmul.mubr.bf16.gmra.mrb[4].mxu0 %v366_v61  ;;  %v3034_v61 = vld [vmem:[%s4329_s2 + $0x2c0] sm:$0xff]   ;;  %v3059_v58 = vld [vmem:[%s4329_s2 + $0x230] sm:$0xff]  }
  0x2c   :  { %884 = vmatmul.mubr.bf16.gmra.mrb[4].mxu1 %v368_v63  ;;  %2671 = vmatpush3.bf16.msra.mxu0 %v3011_v2  ;;  %v3036_v63 = vld [vmem:[%s4329_s2 + $0x280] sm:$0xff]   ;;  %v3039_v2 = vld [vmem:[%s4329_s2 + $0x208] sm:$0xff]   ;;  %v1056_v29 = vld [vmem:[%s4331_s1 + $0x90] sm:$0xff] }
  0x2d   :  { %2711 = vmatpush3.bf16.msra.mxu1 %v3012_v3  ;;  %2672 = vmatprep.subr.bf16.mxu0 %v3013_v4  ;;  %v3040_v3 = vld [vmem:[%s4329_s2 + $0x288] sm:$0xff]   ;;  %v354_v51 = vld [vmem:[%s4330_s0 + $0x1e0] sm:$0xff]  ;;  %v1064_v30 = vld [vmem:[%s4331_s1 + $0xd0] sm:$0xff] }
  0x2e   :  { %2712 = vmatprep.subr.bf16.mxu1 %v3014_v5  ;;  %826 = vmatprep.mubr.bf16.mxu0 %v375_v10  ;;  %v315_v4 = vld [vmem:[%s4330_s0 + $0xa8] sm:$0xff]  ;;  %v3065_v12 = vld [vmem:[%s4329_s2 + $0x340] sm:$0xff]  }
  0x2f   :  { %891 = vmatprep.mubr.bf16.mxu1 %v377_v14  ;;  %v323_v5 = vld [vmem:[%s4330_s0 + $0xe8] sm:$0xff]  ;;  %v370_v14 = vpack.c.bf16 %v322_v11, %v314_v9  ;;  %v1048_v9 = vld [vmem:[%s4331_s1 + $0x50] sm:$0xff]  ;;  %v3066_v13 = vld [vmem:[%s4329_s2 + $0x3c0] sm:$0xff]  }
  0x30   :  { %2673 = vmatpush3.bf16.msra.mxu0 %v3015_v6  ;;  %v371_v6 = vpack.c.bf16 %v323_v5, %v315_v4  ;;  %v1049_v4 = vld [vmem:[%s4331_s1 + $0x58] sm:$0xff]  ;;  %v1038_v5 = vld [vmem:[%s4331_s1] sm:$0xff] }
  0x31   :  { %2713 = vmatpush3.bf16.msra.mxu1 %v3016_v7  ;;  %2674 = vmatprep.subr.bf16.mxu0 %v3017_v20  ;;  %v317_v7 = vld [vmem:[%s4330_s0 + $0xb8] sm:$0xff] }
  0x32   :  { %2714 = vmatprep.subr.bf16.mxu1 %v3018_v21  ;;  %v373_v10 = vpack.c.bf16 %v325_v8, %v317_v7  ;;  %v3045_v20 = vld [vmem:[%s4329_s2 + $0x258] sm:$0xff]   ;;  %v1046_v7 = vld [vmem:[%s4331_s1 + $0x40] sm:$0xff]  ;;  %v1040_v8 = vld [vmem:[%s4331_s1 + $0x10] sm:$0xff] }
  0x33   :  { %827 = vmatmul.mubr.bf16.gmra.mrb[8].mxu0 %v374_v18  ;;  %v3043_v18 = vld [vmem:[%s4329_s2 + $0x210] sm:$0xff]   ;;  %v3046_v21 = vld [vmem:[%s4329_s2 + $0x2d8] sm:$0xff]   ;;  %v1104_v11 = vpack.c.bf16 %v1048_v9, %v1040_v8 }
  0x34   :  { %892 = vmatmul.mubr.bf16.gmra.mrb[8].mxu1 %v376_v19  ;;  %2675 = vmatpush3.bf16.msra.mxu0 %v3019_v22  ;;  %v3044_v19 = vld [vmem:[%s4329_s2 + $0x290] sm:$0xff]   ;;  %v3047_v22 = vld [vmem:[%s4329_s2 + $0x218] sm:$0xff]  }
  0x35   :  { %2715 = vmatpush3.bf16.msra.mxu1 %v3020_v23  ;;  %2676 = vmatprep.subr.bf16.mxu0 %v3021_v24  ;;  %v3048_v23 = vld [vmem:[%s4329_s2 + $0x298] sm:$0xff]   ;;  %v331_v24 = vld [vmem:[%s4330_s0 + $0x128] sm:$0xff]  ;;  %v3089_v8 = vld [vmem:[%s4329_s2 + $0x370] sm:$0xff]  }
  0x36   :  { %2716 = vmatprep.subr.bf16.mxu1 %v3022_v25  ;;  %834 = vmatprep.mubr.bf16.mxu0 %v383_v31  ;;  %v339_v25 = vld [vmem:[%s4330_s0 + $0x168] sm:$0xff]  ;;  %v3090_v9 = vld [vmem:[%s4329_s2 + $0x3f0] sm:$0xff]  }
  0x37   :  { %899 = vmatprep.mubr.bf16.mxu1 %v385_v35  ;;  %v380_v35 = vpack.c.bf16 %v340_v34, %v332_v33  ;;  %v3074_v33 = vld [vmem:[%s4329_s2 + $0x3d0] sm:$0xff]  }
  0x38   :  { %2677 = vmatpush3.bf16.msra.mxu0 %v3023_v26  ;;  %v333_v26 = vld [vmem:[%s4330_s0 + $0x138] sm:$0xff]  ;;  %v3075_v34 = vld [vmem:[%s4329_s2 + $0x310] sm:$0xff]  }
  0x39   :  { %2717 = vmatpush3.bf16.msra.mxu1 %v3024_v27  ;;  %2678 = vmatprep.subr.bf16.mxu0 %v3025_v40  ;;  %v379_v27 = vpack.c.bf16 %v339_v25, %v331_v24  ;;  %v381_v31 = vpack.c.bf16 %v341_v28, %v333_v26  ;;  %v3053_v40 = vld [vmem:[%s4329_s2 + $0x268] sm:$0xff]   ;;  %v1065_v24 = vld [vmem:[%s4331_s1 + $0xd8] sm:$0xff]  ;;  %v1054_v25 = vld [vmem:[%s4331_s1 + $0x80] sm:$0xff] }
  0x3a   :  { %2718 = vmatprep.subr.bf16.mxu1 %v3026_v41  ;;  %v3054_v41 = vld [vmem:[%s4329_s2 + $0x2e8] sm:$0xff]   ;;  %v1062_v26 = vld [vmem:[%s4331_s1 + $0xc0] sm:$0xff] }
  0x3b   :  { %835 = vmatmul.mubr.bf16.gmra.mrb[12].mxu0 %v382_v36  ;;  %v3049_v36 = vld [vmem:[%s4329_s2 + $0x260] sm:$0xff]   ;;  %v1110_v28 = vpack.c.bf16 %v1062_v26, %v1054_v25  ;;  %v1044_v25 = vld [vmem:[%s4331_s1 + $0x30] sm:$0xff] }
  0x3c   :  { %900 = vmatmul.mubr.bf16.gmra.mrb[12].mxu1 %v384_v39  ;;  %2679 = vmatpush3.bf16.msra.mxu0 %v3027_v42  ;;  %v3052_v39 = vld [vmem:[%s4329_s2 + $0x2a0] sm:$0xff]   ;;  %v3055_v42 = vld [vmem:[%s4329_s2 + $0x228] sm:$0xff]   ;;  %v1052_v26 = vld [vmem:[%s4331_s1 + $0x70] sm:$0xff] }
  0x3d   :  { %2719 = vmatpush3.bf16.msra.mxu1 %v3028_v43  ;;  %2680 = vmatprep.subr.bf16.mxu0 %v3029_v44  ;;  %v3056_v43 = vld [vmem:[%s4329_s2 + $0x2a8] sm:$0xff]  }
  0x3e   :  { %2720 = vmatprep.subr.bf16.mxu1 %v3030_v45  ;;  %940 = vmatprep.mubr.bf16.mxu0 %v363_v52  ;;  %v347_v44 = vld [vmem:[%s4330_s0 + $0x1a8] sm:$0xff]  ;;  %v348_v52 = vld [vmem:[%s4330_s0 + $0x1b0] sm:$0xff] }
  0x3f   :  { %1005 = vmatprep.mubr.bf16.mxu1 %v365_v53  ;;  %v355_v45 = vld [vmem:[%s4330_s0 + $0x1e8] sm:$0xff]  ;;  %v386_v53 = vpack.c.bf16 %v354_v51, %v346_v50  ;;  %v388_v55 = vpack.c.bf16 %v356_v54, %v348_v52  ;;  %v1080_v50 = vld [vmem:[%s4331_s1 + $0x150] sm:$0xff]  ;;  %v3081_v52 = vld [vmem:[%s4329_s2 + $0x360] sm:$0xff]  }
  0x40   :  { %2681 = vmatpush3.bf16.msra.mxu0 %v3031_v46  ;;  %v349_v46 = vld [vmem:[%s4330_s0 + $0x1b8] sm:$0xff]  ;;  %v387_v48 = vpack.c.bf16 %v355_v45, %v347_v44  ;;  %v3083_v54 = vld [vmem:[%s4329_s2 + $0x320] sm:$0xff]  }
  0x41   :  { %2721 = vmatpush3.bf16.msra.mxu1 %v3032_v47  ;;  %2746 = vmatprep.subr.bf16.mxu0 %v3033_v60  ;;  %v357_v47 = vld [vmem:[%s4330_s0 + $0x1f8] sm:$0xff] }
  0x42   :  { %2786 = vmatprep.subr.bf16.mxu1 %v3034_v61  ;;  %v389_v49 = vpack.c.bf16 %v357_v47, %v349_v46  ;;  %v3061_v60 = vld [vmem:[%s4329_s2 + $0x278] sm:$0xff]   ;;  %v1070_v46 = vld [vmem:[%s4331_s1 + $0x100] sm:$0xff] }
  0x43   :  { %941 = vmatmul.mubr.bf16.vlgmr.msra.gmra.mrb[16].mxu0 %v362_v57  ;;  %v3058_v57 = vld [vmem:[%s4329_s2 + $0x2f0] sm:$0xff]   ;;  %v3062_v61 = vld [vmem:[%s4329_s2 + $0x2f8] sm:$0xff]   ;;  %v1078_v47 = vld [vmem:[%s4331_s1 + $0x140] sm:$0xff] }
  0x44   :  { %1006 = vmatmul.mubr.bf16.vlgmr.msra.gmra.mrb[16].mxu1 %v364_v59  ;;  %2747 = vmatpush3.bf16.msra.mxu0 %v3035_v62  ;;  %v3060_v59 = vld [vmem:[%s4329_s2 + $0x2b0] sm:$0xff]   ;;  %v3063_v62 = vld [vmem:[%s4329_s2 + $0x238] sm:$0xff]  }
  0x45   :  { %2787 = vmatpush3.bf16.msra.mxu1 %v3036_v63  ;;  %2748 = vmatprep.subr.bf16.mxu0 %v3037_v0  ;;  %v3064_v63 = vld [vmem:[%s4329_s2 + $0x2b8] sm:$0xff]   ;;  %v1039_v0 = vld [vmem:[%s4331_s1 + $0x8] sm:$0xff] }
  0x46   :  { %2788 = vmatprep.subr.bf16.mxu1 %v3038_v1  ;;  %948 = vmatprep.mubr.bf16.mxu0 %v371_v6  ;;  %v1047_v1 = vld [vmem:[%s4331_s1 + $0x48] sm:$0xff] }
  0x47   :  { %1013 = vmatprep.mubr.bf16.mxu1 %v373_v10  ;;  %v1102_v10 = vpack.c.bf16 %v1046_v7, %v1038_v5  ;;  %v1096_v5 = vld [vmem:[%s4331_s1 + $0x1d0] sm:$0xff] }
  0x48   :  { %2749 = vmatpush3.bf16.msra.mxu0 %v3039_v2  ;;  %v1103_v2 = vpack.c.bf16 %v1047_v1, %v1039_v0  ;;  %v1097_v0 = vld [vmem:[%s4331_s1 + $0x1d8] sm:$0xff]  ;;  %v1086_v1 = vld [vmem:[%s4331_s1 + $0x180] sm:$0xff] }
  0x49   :  { %2789 = vmatpush3.bf16.msra.mxu1 %v3040_v3  ;;  %2750 = vmatprep.subr.bf16.mxu0 %v3041_v16  ;;  %v1041_v3 = vld [vmem:[%s4331_s1 + $0x18] sm:$0xff]  ;;  %v3069_v16 = vld [vmem:[%s4329_s2 + $0x348] sm:$0xff]  }
  0x4a   :  { %2790 = vmatprep.subr.bf16.mxu1 %v3042_v17  ;;  %v1105_v6 = vpack.c.bf16 %v1049_v4, %v1041_v3  ;;  %v3070_v17 = vld [vmem:[%s4329_s2 + $0x3c8] sm:$0xff]   ;;  %v1094_v3 = vld [vmem:[%s4331_s1 + $0x1c0] sm:$0xff]  ;;  %v1088_v4 = vld [vmem:[%s4331_s1 + $0x190] sm:$0xff] }
  0x4b   :  { %949 = vmatmul.mubr.bf16.gmra.mrb[20].mxu0 %v370_v14  ;;  %v3067_v14 = vld [vmem:[%s4329_s2 + $0x300] sm:$0xff]   ;;  %v1128_v7 = vpack.c.bf16 %v1096_v5, %v1088_v4  ;;  %v390_v4 = vlaneseq }
  0x4c   :  { %1014 = vmatmul.mubr.bf16.gmra.mrb[20].mxu1 %v372_v15  ;;  %2751 = vmatpush3.bf16.msra.mxu0 %v3043_v18  ;;  %v3068_v15 = vld [vmem:[%s4329_s2 + $0x380] sm:$0xff]   ;;  %v3071_v18 = vld [vmem:[%s4329_s2 + $0x308] sm:$0xff]  }
  0x4d   :  { %2791 = vmatpush3.bf16.msra.mxu1 %v3044_v19  ;;  %2752 = vmatprep.subr.bf16.mxu0 %v3045_v20  ;;  %v3072_v19 = vld [vmem:[%s4329_s2 + $0x388] sm:$0xff]   ;;  %v4029_v5 = vshrl.u32 %v390_v4, 7 }
  0x4e   :  { %2792 = vmatprep.subr.bf16.mxu1 %v3046_v21  ;;  %956 = vmatprep.mubr.bf16.mxu0 %v379_v27  ;;  %v1055_v20 = vld [vmem:[%s4331_s1 + $0x88] sm:$0xff] }
  0x4f   :  { %1021 = vmatprep.mubr.bf16.mxu1 %v381_v31  ;;  %v1063_v21 = vld [vmem:[%s4331_s1 + $0xc8] sm:$0xff]  ;;  %v1112_v31 = vpack.c.bf16 %v1064_v30, %v1056_v29  ;;  %v1061_v30 = vld [vmem:[%s4331_s1 + $0xb8] sm:$0xff] }
  0x50   :  { %2753 = vmatpush3.bf16.msra.mxu0 %v3047_v22  ;;  %v1057_v22 = vld [vmem:[%s4331_s1 + $0x98] sm:$0xff]  ;;  %v1067_v29 = vld [vmem:[%s4331_s1 + $0xe8] sm:$0xff] }
  0x51   :  { %2793 = vmatpush3.bf16.msra.mxu1 %v3048_v23  ;;  %2754 = vmatprep.subr.bf16.mxu0 %v3049_v36  ;;  %v1111_v23 = vpack.c.bf16 %v1063_v21, %v1055_v20  ;;  %v1113_v27 = vpack.c.bf16 %v1065_v24, %v1057_v22  ;;  %v3077_v36 = vld [vmem:[%s4329_s2 + $0x358] sm:$0xff]   ;;  %v1042_v21 = vld [vmem:[%s4331_s1 + $0x20] sm:$0xff] }
  0x52   :  { %2794 = vmatprep.subr.bf16.mxu1 %v3050_v37  ;;  %v3078_v37 = vld [vmem:[%s4329_s2 + $0x3d8] sm:$0xff]   ;;  %v1050_v22 = vld [vmem:[%s4331_s1 + $0x60] sm:$0xff] }
  0x53   :  { %957 = vmatmul.mubr.bf16.gmra.mrb[24].mxu0 %v378_v32  ;;  %v3073_v32 = vld [vmem:[%s4329_s2 + $0x350] sm:$0xff]   ;;  %v1053_v20 = vld [vmem:[%s4331_s1 + $0x78] sm:$0xff]  ;;  %v1106_v24 = vpack.c.bf16 %v1050_v22, %v1042_v21 }
  0x54   :  { %1022 = vmatmul.mubr.bf16.gmra.mrb[24].mxu1 %v380_v35  ;;  %2755 = vmatpush3.bf16.msra.mxu0 %v3051_v38  ;;  %v3076_v35 = vld [vmem:[%s4329_s2 + $0x390] sm:$0xff]   ;;  %v3079_v38 = vld [vmem:[%s4329_s2 + $0x318] sm:$0xff]  }
  0x55   :  { %2795 = vmatpush3.bf16.msra.mxu1 %v3052_v39  ;;  %2756 = vmatprep.subr.bf16.mxu0 %v3053_v40  ;;  %v3080_v39 = vld [vmem:[%s4329_s2 + $0x398] sm:$0xff]   ;;  %v1071_v40 = vld [vmem:[%s4331_s1 + $0x108] sm:$0xff] }
  0x56   :  { %2796 = vmatprep.subr.bf16.mxu1 %v3054_v41  ;;  %964 = vmatprep.mubr.bf16.mxu0 %v387_v48  ;;  %v1079_v41 = vld [vmem:[%s4331_s1 + $0x148] sm:$0xff]  ;;  %v1072_v48 = vld [vmem:[%s4331_s1 + $0x110] sm:$0xff] }
  0x57   :  { %1029 = vmatprep.mubr.bf16.mxu1 %v389_v49  ;;  %v1119_v44 = vpack.c.bf16 %v1079_v41, %v1071_v40  ;;  %v1118_v49 = vpack.c.bf16 %v1078_v47, %v1070_v46  ;;  %v1120_v51 = vpack.c.bf16 %v1080_v50, %v1072_v48  ;;  %v1077_v40 = vld [vmem:[%s4331_s1 + $0x138] sm:$0xff]  ;;  %v1074_v46 = vld [vmem:[%s4331_s1 + $0x120] sm:$0xff]  ;;  %v1076_v48 = vld [vmem:[%s4331_s1 + $0x130] sm:$0xff] }
  0x58   :  { %2757 = vmatpush3.bf16.msra.mxu0 %v3055_v42  ;;  %v1073_v42 = vld [vmem:[%s4331_s1 + $0x118] sm:$0xff]  ;;  %v1082_v47 = vld [vmem:[%s4331_s1 + $0x160] sm:$0xff]  ;;  %v1091_v50 = vld [vmem:[%s4331_s1 + $0x1a8] sm:$0xff] }
  0x59   :  { %2797 = vmatpush3.bf16.msra.mxu1 %v3056_v43  ;;  %2758 = vmatprep.subr.bf16.mxu0 %v3057_v56  ;;  %v1081_v43 = vld [vmem:[%s4331_s1 + $0x158] sm:$0xff]  ;;  %v3085_v56 = vld [vmem:[%s4329_s2 + $0x368] sm:$0xff]  }
  0x5a   :  { %2798 = vmatprep.subr.bf16.mxu1 %v3058_v57  ;;  %v1121_v45 = vpack.c.bf16 %v1081_v43, %v1073_v42  ;;  %v3086_v57 = vld [vmem:[%s4329_s2 + $0x3e8] sm:$0xff]   ;;  %v1085_v41 = vld [vmem:[%s4331_s1 + $0x178] sm:$0xff] }
  0x5b   :  { %965 = vmatmul.mubr.bf16.gmra.mrb[28].mxu0 %v386_v53  ;;  %v3082_v53 = vld [vmem:[%s4329_s2 + $0x3e0] sm:$0xff]  }
  0x5c   :  { %1030 = vmatmul.mubr.bf16.gmra.mrb[28].mxu1 %v388_v55  ;;  %2759 = vmatpush3.bf16.msra.mxu0 %v3059_v58  ;;  %v3084_v55 = vld [vmem:[%s4329_s2 + $0x3a0] sm:$0xff]   ;;  %v3087_v58 = vld [vmem:[%s4329_s2 + $0x328] sm:$0xff]  }
  0x5d   :  { %2799 = vmatpush3.bf16.msra.mxu1 %v3060_v59  ;;  %2760 = vmatprep.subr.bf16.mxu0 %v3061_v60  ;;  %v3088_v59 = vld [vmem:[%s4329_s2 + $0x3a8] sm:$0xff]  }
  0x5e   :  { %2800 = vmatprep.subr.bf16.mxu1 %v3062_v61  ;;  %1554 = vmatprep.mubr.bf16.mxu0 %v1103_v2  ;;  %v1087_v60 = vld [vmem:[%s4331_s1 + $0x188] sm:$0xff] }
  0x5f   :  { %1619 = vmatprep.mubr.bf16.mxu1 %v1105_v6  ;;  %v1095_v61 = vld [vmem:[%s4331_s1 + $0x1c8] sm:$0xff]  ;;  %v1126_v6 = vpack.c.bf16 %v1094_v3, %v1086_v1 }
  0x60   :  { %2761 = vmatpush3.bf16.msra.mxu0 %v3063_v62  ;;  %v1127_v62 = vpack.c.bf16 %v1095_v61, %v1087_v60  ;;  %v1090_v60 = vld [vmem:[%s4331_s1 + $0x1a0] sm:$0xff] }
  0x61   :  { %2801 = vmatpush3.bf16.msra.mxu1 %v3064_v63  ;;  %2826 = vmatprep.subr.bf16.mxu0 %v3065_v12  ;;  %v1089_v63 = vld [vmem:[%s4331_s1 + $0x198] sm:$0xff]  ;;  %v1098_v61 = vld [vmem:[%s4331_s1 + $0x1e0] sm:$0xff] }
  0x62   :  { %2866 = vmatprep.subr.bf16.mxu1 %v3066_v13  ;;  %v1129_v2 = vpack.c.bf16 %v1097_v0, %v1089_v63  ;;  %v3093_v12 = vld [vmem:[%s4329_s2 + $0x378] sm:$0xff]   ;;  %v1100_v63 = vld [vmem:[%s4331_s1 + $0x1f0] sm:$0xff]  ;;  %v1130_v1 = vpack.c.bf16 %v1098_v61, %v1090_v60 }
  0x63   :  { %1555 = vmatmul.mubr.bf16.vlgmr.msra.gmra.mrb[32].mxu0 %v1102_v10  ;;  %v3091_v10 = vld [vmem:[%s4329_s2 + $0x330] sm:$0xff]   ;;  %v3094_v13 = vld [vmem:[%s4329_s2 + $0x3f8] sm:$0xff]  }
  0x64   :  { %1620 = vmatmul.mubr.bf16.vlgmr.msra.gmra.mrb[32].mxu1 %v1104_v11  ;;  %2827 = vmatpush3.bf16.msra.mxu0 %v3067_v14  ;;  %v3092_v11 = vld [vmem:[%s4329_s2 + $0x3b0] sm:$0xff]   ;;  %v3095_v14 = vld [vmem:[%s4329_s2 + $0x338] sm:$0xff]  }
  0x65   :  { %2867 = vmatpush3.bf16.msra.mxu1 %v3068_v15  ;;  %2828 = vmatprep.subr.bf16.mxu0 %v3069_v16  ;;  %v3096_v15 = vld [vmem:[%s4329_s2 + $0x3b8] sm:$0xff]   ;;  %v1043_v16 = vld [vmem:[%s4331_s1 + $0x28] sm:$0xff]  ;;  %v3099_v0 = vld [vmem:[%s4329_s2 + $0x410] sm:$0xff]  }
  0x66   :  { %2868 = vmatprep.subr.bf16.mxu1 %v3070_v17  ;;  %1562 = vmatprep.mubr.bf16.mxu0 %v1111_v23  ;;  %v1051_v17 = vld [vmem:[%s4331_s1 + $0x68] sm:$0xff] }
  0x67   :  { %1627 = vmatprep.mubr.bf16.mxu1 %v1113_v27  ;;  %v1059_v27 = vld [vmem:[%s4331_s1 + $0xa8] sm:$0xff] }
  0x68   :  { %2829 = vmatpush3.bf16.msra.mxu0 %v3071_v18  ;;  %v1045_v18 = vld [vmem:[%s4331_s1 + $0x38] sm:$0xff] }
  0x69   :  { %2869 = vmatpush3.bf16.msra.mxu1 %v3072_v19  ;;  %2830 = vmatprep.subr.bf16.mxu0 %v3073_v32  ;;  %v1107_v19 = vpack.c.bf16 %v1051_v17, %v1043_v16  ;;  %v1109_v23 = vpack.c.bf16 %v1053_v20, %v1045_v18  ;;  %v1115_v32 = vpack.c.bf16 %v1067_v29, %v1059_v27 }
  0x6a   :  { %2870 = vmatprep.subr.bf16.mxu1 %v3074_v33 }
  0x6b   :  { %1563 = vmatmul.mubr.bf16.gmra.mrb[36].mxu0 %v1110_v28  ;;  %v1108_v28 = vpack.c.bf16 %v1052_v26, %v1044_v25 }
  0x6c   :  { %1628 = vmatmul.mubr.bf16.gmra.mrb[36].mxu1 %v1112_v31  ;;  %2831 = vmatpush3.bf16.msra.mxu0 %v3075_v34  ;;  %v1069_v31 = vld [vmem:[%s4331_s1 + $0xf8] sm:$0xff]  ;;  %v1058_v34 = vld [vmem:[%s4331_s1 + $0xa0] sm:$0xff] }
  0x6d   :  { %2871 = vmatpush3.bf16.msra.mxu1 %v3076_v35  ;;  %2832 = vmatprep.subr.bf16.mxu0 %v3077_v36  ;;  %v1117_v33 = vpack.c.bf16 %v1069_v31, %v1061_v30  ;;  %v1066_v35 = vld [vmem:[%s4331_s1 + $0xe0] sm:$0xff]  ;;  %v1060_v36 = vld [vmem:[%s4331_s1 + $0xb0] sm:$0xff] }
  0x6e   :  { %2872 = vmatprep.subr.bf16.mxu1 %v3078_v37  ;;  %1570 = vmatprep.mubr.bf16.mxu0 %v1119_v44  ;;  %v1068_v37 = vld [vmem:[%s4331_s1 + $0xf0] sm:$0xff]  ;;  %v1114_v42 = vpack.c.bf16 %v1066_v35, %v1058_v34 }
  0x6f   :  { %1635 = vmatprep.mubr.bf16.mxu1 %v1121_v45  ;;  %v1116_v43 = vpack.c.bf16 %v1068_v37, %v1060_v36  ;;  %v1125_v45 = vpack.c.bf16 %v1085_v41, %v1077_v40 }
  0x70   :  { %2833 = vmatpush3.bf16.msra.mxu0 %v3079_v38  ;;  %v1075_v38 = vld [vmem:[%s4331_s1 + $0x128] sm:$0xff] }
  0x71   :  { %2873 = vmatpush3.bf16.msra.mxu1 %v3080_v39  ;;  %2834 = vmatprep.subr.bf16.mxu0 %v3081_v52  ;;  %v1083_v39 = vld [vmem:[%s4331_s1 + $0x168] sm:$0xff]  ;;  %v3097_v52 = vld [vmem:[%s4329_s2 + $0x400] sm:$0xff]  }
  0x72   :  { %2874 = vmatprep.subr.bf16.mxu1 %v3082_v53  ;;  %v1123_v44 = vpack.c.bf16 %v1083_v39, %v1075_v38  ;;  %v1093_v53 = vld [vmem:[%s4331_s1 + $0x1b8] sm:$0xff] }
  0x73   :  { %1571 = vmatmul.mubr.bf16.gmra.mrb[40].mxu0 %v1118_v49  ;;  %v1084_v49 = vld [vmem:[%s4331_s1 + $0x170] sm:$0xff] }
  0x74   :  { %1636 = vmatmul.mubr.bf16.gmra.mrb[40].mxu1 %v1120_v51  ;;  %2835 = vmatpush3.bf16.msra.mxu0 %v3083_v54  ;;  %v1099_v51 = vld [vmem:[%s4331_s1 + $0x1e8] sm:$0xff]  ;;  %v1101_v54 = vld [vmem:[%s4331_s1 + $0x1f8] sm:$0xff] }
  0x75   :  { %2875 = vmatpush3.bf16.msra.mxu1 %v3084_v55  ;;  %2836 = vmatprep.subr.bf16.mxu0 %v3085_v56  ;;  %v3098_v55 = vld [vmem:[%s4329_s2 + $0x408] sm:$0xff]   ;;  %v1122_v56 = vpack.c.bf16 %v1082_v47, %v1074_v46 }
  0x76   :  { %2876 = vmatprep.subr.bf16.mxu1 %v3086_v57  ;;  %1578 = vmatprep.mubr.bf16.mxu0 %v1127_v62  ;;  %v1124_v57 = vpack.c.bf16 %v1084_v49, %v1076_v48  ;;  %v1092_v62 = vld [vmem:[%s4331_s1 + $0x1b0] sm:$0xff] }
  0x77   :  { %1643 = vmatprep.mubr.bf16.mxu1 %v1129_v2  ;;  %v3100_v2 = vld [vmem:[%s4329_s2 + $0x418] sm:$0xff]   ;;  %v1132_v3 = vpack.c.bf16 %v1100_v63, %v1092_v62 }
  0x78   :  { %2837 = vmatpush3.bf16.msra.mxu0 %v3087_v58  ;;  %v1131_v58 = vpack.c.bf16 %v1099_v51, %v1091_v50 }
  0x79   :  { %2877 = vmatpush3.bf16.msra.mxu1 %v3088_v59  ;;  %2838 = vmatprep.subr.bf16.mxu0 %v3089_v8  ;;  %v1133_v59 = vpack.c.bf16 %v1101_v54, %v1093_v53 }
  0x7a   :  { %2878 = vmatprep.subr.bf16.mxu1 %v3090_v9 }
  0x7b   :  { %1579 = vmatmul.mubr.bf16.gmra.mrb[44].mxu0 %v1126_v6  ;;  %v392_v6 = vsub.s32 1, %v4029_v5 }
  0x7c   :  { %1644 = vmatmul.mubr.bf16.gmra.mrb[44].mxu1 %v1128_v7  ;;  %2839 = vmatpush3.bf16.msra.mxu0 %v3091_v10  ;;  %v4035_v7 = vld [vmem:[%s4332_s3] sm:$0xff] }
  0x7d   :  { %2879 = vmatpush3.bf16.msra.mxu1 %v3092_v11  ;;  %2840 = vmatprep.subr.bf16.mxu0 %v3093_v12  ;;  %v4038_v9 = vrot.slane %v4035_v7, %v392_v6 }
  0x7e   :  { %2880 = vmatprep.subr.bf16.mxu1 %v3094_v13  ;;  %1684 = vmatprep.mubr.bf16.mxu0 %v1107_v19 }
  0x7f   :  { %1749 = vmatprep.mubr.bf16.mxu1 %v1109_v23 }
  0x80   :  { %2841 = vmatpush3.bf16.msra.mxu0 %v3095_v14 }
  0x81   :  { %2881 = vmatpush3.bf16.msra.mxu1 %v3096_v15  ;;  %2926 = vmatprep.subr.bf16.mxu0 %v3097_v52 }
  0x83   :  { %1685 = vmatmul.mubr.bf16.vlgmr.msra.gmra.mrb[48].mxu0 %v1106_v24 }
  0x84   :  { %1750 = vmatmul.mubr.bf16.vlgmr.msra.gmra.mrb[48].mxu1 %v1108_v28  ;;  %1692 = vmatprep.mubr.bf16.mxu0 %v1115_v32 }
  0x85   :  { %1757 = vmatprep.mubr.bf16.mxu1 %v1117_v33  ;;  %2927 = vmatpush3.bf16.msra.mxu0 %v3097_v52 }
  0x86   :  { %2928 = vmatprep.subr.bf16.mxu0 %v3098_v55 }
  0x89   :  { %2929 = vmatpush3.bf16.msra.mxu0 %v3098_v55 }
  0x8a   :  { %2930 = vmatprep.subr.bf16.mxu0 %v3099_v0 }
  0x8b   :  { %1693 = vmatmul.mubr.bf16.gmra.mrb[52].mxu0 %v1114_v42 }
  0x8c   :  { %1758 = vmatmul.mubr.bf16.gmra.mrb[52].mxu1 %v1116_v43  ;;  %1700 = vmatprep.mubr.bf16.mxu0 %v1123_v44 }
  0x8d   :  { %1765 = vmatprep.mubr.bf16.mxu1 %v1125_v45  ;;  %2931 = vmatpush3.bf16.msra.mxu0 %v3099_v0 }
  0x8e   :  { %2932 = vmatprep.subr.bf16.mxu0 %v3100_v2 }
  0x91   :  { %2933 = vmatpush3.bf16.msra.mxu0 %v3100_v2  ;;  %v1791_v2 = vld [vmem:[%s4333_s4 + $0x8] sm:$0xff] }
  0x93   :  { %1701 = vmatmul.mubr.bf16.gmra.mrb[56].mxu0 %v1122_v56 }
  0x94   :  { %1766 = vmatmul.mubr.bf16.gmra.mrb[56].mxu1 %v1124_v57  ;;  %1708 = vmatprep.mubr.bf16.mxu0 %v1131_v58  ;;  %v3218_v58 = vmov 0  }
  0x95   :  { %1773 = vmatprep.mubr.bf16.mxu1 %v1133_v59  ;;  %2967 = vset.pattern.permute.xlu0 %v3218_v58  ;;  %v1790_v59 = vld [vmem:[%s4333_s4] sm:$0xff] }
  0x96   :  { %2968 = vset.pattern.permute.xlu1 %v3218_v58  ;;  %1808 = vperm.xlu0 %2967, %v1790_v59  }
  0x9a   :  { %1813 = vperm.xlu0 %2967, %v1791_v2  }
  0x9b   :  { %1709 = vmatmul.mubr.bf16.gmra.mrb[60].mxu0 %v1130_v1  ;;  %v1798_v1 = vld [vmem:[%s4333_s4 + $0x40] sm:$0xff] }
  0x9c   :  { %1774 = vmatmul.mubr.bf16.gmra.mrb[60].mxu1 %v1132_v3  ;;  %1848 = vperm.xlu1 %2968, %v1798_v1  }
  0xf6   :  { %v2602_v8 = vpop.f32.mrb[0].mxu0 }
  0xf7   :  { %v2642_v10 = vpop.f32.mrb[0].mxu1  ;;  %v2603_v11 = vpop.f32.mrb[1].mxu0 }
  0xf8   :  { %v2604_v12 = vadd.f32 %v2603_v11, %v2602_v8  ;;  %v2643_v13 = vpop.f32.mrb[1].mxu1  ;;  %v2605_v14 = vpop.f32.mrb[2].mxu0 }
  0xf9   :  { %v2644_v15 = vadd.f32 %v2643_v13, %v2642_v10  ;;  %v2645_v16 = vpop.f32.mrb[2].mxu1  ;;  %v2606_v17 = vpop.f32.mrb[3].mxu0 }
  0xfa   :  { %v813_v18 = vadd.f32 %v2604_v12, %v4038_v9  ;;  %v2607_v19 = vadd.f32 %v2606_v17, %v2605_v14  ;;  %v2646_v20 = vpop.f32.mrb[3].mxu1  ;;  %v1799_v12 = vld [vmem:[%s4333_s4 + $0x48] sm:$0xff] }
  0xfb   :  { %v2647_v21 = vadd.f32 %v2646_v20, %v2645_v16  ;;  %v1792_v16 = vld [vmem:[%s4333_s4 + $0x10] sm:$0xff]  ;;  %1853 = vperm.xlu1 %2968, %v1799_v12  }
  0xfc   :  { %v4041_v22 = vadd.f32 %v2644_v15, %v813_v18  ;;  %v816_v23 = vadd.f32 %v2607_v19, %v4038_v9  ;;  %v1793_v18 = vld [vmem:[%s4333_s4 + $0x18] sm:$0xff]  ;;  %1818 = vperm.xlu0 %2967, %v1792_v16   ;;  %v1800_v19 = vld [vmem:[%s4333_s4 + $0x50] sm:$0xff] }
  0xfe   :  { %v4044_v24 = vadd.f32 %v2647_v21, %v816_v23  ;;  %v2608_v25 = vpop.f32.mrb[4].mxu0  ;;  %v1801_v23 = vld [vmem:[%s4333_s4 + $0x58] sm:$0xff] }
  0xff   :  { %v2648_v26 = vpop.f32.mrb[4].mxu1  ;;  %v2609_v27 = vpop.f32.mrb[5].mxu0  ;;  %1823 = vperm.xlu1 %2968, %v1793_v18  }
 0x100   :  { %v2610_v28 = vadd.f32 %v2609_v27, %v2608_v25  ;;  %v2649_v29 = vpop.f32.mrb[5].mxu1  ;;  %v2611_v30 = vpop.f32.mrb[6].mxu0  ;;  %1858 = vperm.xlu0 %2967, %v1800_v19  }
 0x101   :  { %v2650_v31 = vadd.f32 %v2649_v29, %v2648_v26  ;;  %v2651_v32 = vpop.f32.mrb[6].mxu1  ;;  %v2612_v33 = vpop.f32.mrb[7].mxu0 }
 0x102   :  { %v821_v34 = vadd.f32 %v2610_v28, %v4038_v9  ;;  %v2613_v35 = vadd.f32 %v2612_v33, %v2611_v30  ;;  %v2652_v36 = vpop.f32.mrb[7].mxu1 }
 0x103   :  { %v2653_v37 = vadd.f32 %v2652_v36, %v2651_v32  ;;  %1863 = vperm.xlu1 %2968, %v1801_v23   ;;  %v1795_v36 = vld [vmem:[%s4333_s4 + $0x28] sm:$0xff] }
 0x104   :  { %v4047_v38 = vadd.f32 %v2650_v31, %v821_v34  ;;  %v824_v39 = vadd.f32 %v2613_v35, %v4038_v9  ;;  %v1794_v31 = vld [vmem:[%s4333_s4 + $0x20] sm:$0xff] }
 0x105   :  { %1828 = vperm.xlu0 %2967, %v1794_v31  }
 0x106   :  { %v4050_v40 = vadd.f32 %v2653_v37, %v824_v39  ;;  %v2614_v41 = vpop.f32.mrb[8].mxu0 }
 0x107   :  { %v2654_v42 = vpop.f32.mrb[8].mxu1  ;;  %v2615_v43 = vpop.f32.mrb[9].mxu0  ;;  %1833 = vperm.xlu1 %2968, %v1795_v36   ;;  %v1136_v36 = vsub.s32 2, %v4029_v5 }
 0x108   :  { %v2655_v44 = vpop.f32.mrb[9].mxu1  ;;  %v2616_v45 = vadd.f32 %v2615_v43, %v2614_v41  ;;  %v2617_v47 = vpop.f32.mrb[10].mxu0  ;;  %v1802_v41 = vld [vmem:[%s4333_s4 + $0x60] sm:$0xff] }
 0x109   :  { %v2656_v46 = vadd.f32 %v2655_v44, %v2654_v42  ;;  %v2657_v48 = vpop.f32.mrb[10].mxu1  ;;  %v2618_v49 = vpop.f32.mrb[11].mxu0  ;;  %1868 = vperm.xlu0 %2967, %v1802_v41  }
 0x10a   :  { %v2658_v50 = vpop.f32.mrb[11].mxu1  ;;  %v829_v51 = vadd.f32 %v2616_v45, %v4038_v9  ;;  %v2619_v52 = vadd.f32 %v2618_v49, %v2617_v47 }
 0x10b   :  { %v2659_v53 = vadd.f32 %v2658_v50, %v2657_v48 }
 0x10c   :  { %v4053_v54 = vadd.f32 %v2656_v46, %v829_v51  ;;  %v832_v55 = vadd.f32 %v2619_v52, %v4038_v9  ;;  %v1797_v52 = vld [vmem:[%s4333_s4 + $0x38] sm:$0xff] }
 0x10e   :  { %v4056_v56 = vadd.f32 %v2659_v53, %v832_v55  ;;  %v2620_v57 = vpop.f32.mrb[12].mxu0 }
 0x10f   :  { %v2660_v60 = vpop.f32.mrb[12].mxu1  ;;  %v2621_v61 = vpop.f32.mrb[13].mxu0 }
 0x110   :  { %v2622_v62 = vadd.f32 %v2621_v61, %v2620_v57  ;;  %v2661_v63 = vpop.f32.mrb[13].mxu1  ;;  %v2623_v0 = vpop.f32.mrb[14].mxu0 }
 0x111   :  { %v2662_v3 = vadd.f32 %v2661_v63, %v2660_v60  ;;  %v2663_v4 = vpop.f32.mrb[14].mxu1  ;;  %v2624_v6 = vpop.f32.mrb[15].mxu0  ;;  %v1804_v60 = vld [vmem:[%s4333_s4 + $0x70] sm:$0xff]  ;;  %v1805_v63 = vld [vmem:[%s4333_s4 + $0x78] sm:$0xff] }
 0x112   :  { %v837_v8 = vadd.f32 %v2622_v62, %v4038_v9  ;;  %v2625_v10 = vadd.f32 %v2624_v6, %v2623_v0  ;;  %v2664_v11 = vpop.f32.mrb[15].mxu1 }
 0x113   :  { %v2665_v13 = vadd.f32 %v2664_v11, %v2663_v4 }
 0x114   :  { %v4071_v14 = vadd.f32 %v2662_v3, %v837_v8  ;;  %v840_v15 = vadd.f32 %v2625_v10, %v4038_v9 }
 0x116   :  { %v4077_v17 = vadd.f32 %v2665_v13, %v840_v15  ;;  %v2682_v20 = vpop.f32.mrb[16].mxu0 }
 0x117   :  { %v2722_v21 = vpop.f32.mrb[16].mxu1  ;;  %v2683_v9 = vpop.f32.mrb[17].mxu0 }
 0x118   :  { %v2684_v25 = vadd.f32 %v2683_v9, %v2682_v20  ;;  %v2723_v26 = vpop.f32.mrb[17].mxu1  ;;  %v2685_v27 = vpop.f32.mrb[18].mxu0 }
 0x119   :  { %v2724_v28 = vadd.f32 %v2723_v26, %v2722_v21  ;;  %v2725_v29 = vpop.f32.mrb[18].mxu1  ;;  %v2686_v30 = vpop.f32.mrb[19].mxu0 }
 0x11a   :  { %v943_v32 = vadd.f32 %v2684_v25, %v4041_v22  ;;  %v2687_v33 = vadd.f32 %v2686_v30, %v2685_v27  ;;  %v2726_v34 = vpop.f32.mrb[19].mxu1  ;;  %v1803_v22 = vld [vmem:[%s4333_s4 + $0x68] sm:$0xff] }
 0x11b   :  { %v2727_v35 = vadd.f32 %v2726_v34, %v2725_v29  ;;  %1873 = vperm.xlu1 %2968, %v1803_v22  }
 0x11c   :  { %v4095_v37 = vadd.f32 %v2724_v28, %v943_v32  ;;  %v946_v39 = vadd.f32 %v2687_v33, %v4044_v24  ;;  %v1796_v24 = vld [vmem:[%s4333_s4 + $0x30] sm:$0xff] }
 0x11d   :  { %1838 = vperm.xlu0 %2967, %v1796_v24  }
 0x11e   :  { %v4101_v42 = vadd.f32 %v2727_v35, %v946_v39  ;;  %v2688_v44 = vpop.f32.mrb[20].mxu0 }
 0x11f   :  { %v2728_v45 = vpop.f32.mrb[20].mxu1  ;;  %v2689_v46 = vpop.f32.mrb[21].mxu0  ;;  %1843 = vperm.xlu1 %2968, %v1797_v52  }
 0x120   :  { %v1782_v43 = vpack.c.bf16 %v4101_v42, %v4095_v37  ;;  %v2729_v47 = vpop.f32.mrb[21].mxu1  ;;  %v2690_v48 = vadd.f32 %v2689_v46, %v2688_v44  ;;  %v2691_v50 = vpop.f32.mrb[22].mxu0  ;;  %v1137_v44 = vrot.slane %v4035_v7, %v1136_v36 }
 0x121   :  { %v2730_v49 = vadd.f32 %v2729_v47, %v2728_v45  ;;  %v2731_v51 = vpop.f32.mrb[22].mxu1  ;;  %v2692_v53 = vpop.f32.mrb[23].mxu0  ;;  %1878 = vperm.xlu0 %2967, %v1804_v60  }
 0x122   :  { %2934 = vmatprep.mubr.msk.bf16.mxu0 %vm1910_vm0, %v1782_v43  ;;  %v2732_v55 = vpop.f32.mrb[23].mxu1  ;;  %v951_v57 = vadd.f32 %v2690_v48, %v4047_v38  ;;  %v2693_v58 = vadd.f32 %v2692_v53, %v2691_v50 }
 0x123   :  { %v2733_v59 = vadd.f32 %v2732_v55, %v2731_v51  ;;  %1883 = vperm.xlu1 %2968, %v1805_v63  }
 0x124   :  { %v4119_v61 = vadd.f32 %v2730_v49, %v951_v57  ;;  %v954_v62 = vadd.f32 %v2693_v58, %v4050_v40 }
 0x126   :  { %v4125_v0 = vadd.f32 %v2733_v59, %v954_v62  ;;  %v2694_v1 = vpop.f32.mrb[24].mxu0 }
 0x127   :  { %v2734_v2 = vpop.f32.mrb[24].mxu1  ;;  %v2695_v3 = vpop.f32.mrb[25].mxu0 }
 0x128   :  { %v1783_v38 = vpack.c.bf16 %v4125_v0, %v4119_v61  ;;  %v2696_v4 = vadd.f32 %v2695_v3, %v2694_v1  ;;  %v2735_v6 = vpop.f32.mrb[25].mxu1  ;;  %v2697_v8 = vpop.f32.mrb[26].mxu0 }
 0x129   :  { %v2736_v40 = vadd.f32 %v2735_v6, %v2734_v2  ;;  %v2737_v10 = vpop.f32.mrb[26].mxu1  ;;  %v2698_v11 = vpop.f32.mrb[27].mxu0 }
 0x12a   :  { %2935 = vmatmul.mubr.msk.bf16.vlgmr.msra.gmra.mrb[64].mxu0 %vm1910_vm0, %v1783_v38  ;;  %v959_v12 = vadd.f32 %v2696_v4, %v4053_v54  ;;  %v2699_v13 = vadd.f32 %v2698_v11, %v2697_v8  ;;  %v2738_v15 = vpop.f32.mrb[27].mxu1 }
 0x12b   :  { %v2739_v16 = vadd.f32 %v2738_v15, %v2737_v10 }
 0x12c   :  { %v4131_v18 = vadd.f32 %v2736_v40, %v959_v12  ;;  %v962_v19 = vadd.f32 %v2699_v13, %v4056_v56 }
 0x12e   :  { %v4134_v20 = vadd.f32 %v2739_v16, %v962_v19  ;;  %v2700_v9 = vpop.f32.mrb[28].mxu0 }
 0x12f   :  { %v2740_v23 = vpop.f32.mrb[28].mxu1  ;;  %v2701_v25 = vpop.f32.mrb[29].mxu0 }
 0x130   :  { %v1784_v21 = vpack.c.bf16 %v4134_v20, %v4131_v18  ;;  %v2702_v26 = vadd.f32 %v2701_v25, %v2700_v9  ;;  %v2741_v27 = vpop.f32.mrb[29].mxu1  ;;  %v2703_v54 = vpop.f32.mrb[30].mxu0 }
 0x131   :  { %v2742_v28 = vadd.f32 %v2741_v27, %v2740_v23  ;;  %v2743_v29 = vpop.f32.mrb[30].mxu1  ;;  %v2704_v30 = vpop.f32.mrb[31].mxu0 }
 0x132   :  { %2938 = vmatprep.mubr.msk.bf16.mxu0 %vm1910_vm0, %v1784_v21  ;;  %v967_v31 = vadd.f32 %v2702_v26, %v4071_v14  ;;  %v2705_v32 = vadd.f32 %v2704_v30, %v2703_v54  ;;  %v2744_v56 = vpop.f32.mrb[31].mxu1 }
 0x133   :  { %v2745_v33 = vadd.f32 %v2744_v56, %v2743_v29 }
 0x134   :  { %v4140_v34 = vadd.f32 %v2742_v28, %v967_v31  ;;  %v970_v35 = vadd.f32 %v2705_v32, %v4077_v17 }
 0x136   :  { %v4144_v39 = vadd.f32 %v2745_v33, %v970_v35  ;;  %v2762_v22 = vpop.f32.mrb[32].mxu0 }
 0x137   :  { %v2802_v43 = vpop.f32.mrb[32].mxu1  ;;  %v2763_v45 = vpop.f32.mrb[33].mxu0 }
 0x138   :  { %v1785_v41 = vpack.c.bf16 %v4144_v39, %v4140_v34  ;;  %v2803_v14 = vpop.f32.mrb[33].mxu1  ;;  %v2764_v24 = vadd.f32 %v2763_v45, %v2762_v22  ;;  %v2765_v47 = vpop.f32.mrb[34].mxu0 }
 0x139   :  { %v2804_v46 = vadd.f32 %v2803_v14, %v2802_v43  ;;  %v2805_v48 = vpop.f32.mrb[34].mxu1  ;;  %v2766_v17 = vpop.f32.mrb[35].mxu0 }
 0x13a   :  { %2939 = vmatmul.mubr.msk.bf16.gmra.mrb[68].mxu0 %vm1910_vm0, %v1785_v41  ;;  %v2806_v49 = vpop.f32.mrb[35].mxu1  ;;  %v1557_v50 = vadd.f32 %v2764_v24, %v1137_v44  ;;  %v2767_v51 = vadd.f32 %v2766_v17, %v2765_v47 }
 0x13b   :  { %v2807_v52 = vadd.f32 %v2806_v49, %v2805_v48 }
 0x13c   :  { %v1622_v53 = vadd.f32 %v2804_v46, %v1557_v50  ;;  %v1560_v55 = vadd.f32 %v2767_v51, %v1137_v44 }
 0x13e   :  { %v4150_v57 = vadd.f32 %v2807_v52, %v1560_v55  ;;  %v2768_v58 = vpop.f32.mrb[36].mxu0 }
 0x13f   :  { %v2808_v59 = vpop.f32.mrb[36].mxu1  ;;  %v2769_v60 = vpop.f32.mrb[37].mxu0 }
 0x140   :  { %v2770_v62 = vadd.f32 %v2769_v60, %v2768_v58  ;;  %v2809_v63 = vpop.f32.mrb[37].mxu1  ;;  %v2771_v38 = vpop.f32.mrb[38].mxu0 }
 0x141   :  { %v2810_v1 = vadd.f32 %v2809_v63, %v2808_v59  ;;  %v2811_v2 = vpop.f32.mrb[38].mxu1  ;;  %v2772_v3 = vpop.f32.mrb[39].mxu0 }
 0x142   :  { %v1565_v4 = vadd.f32 %v2770_v62, %v1137_v44  ;;  %v2773_v6 = vadd.f32 %v2772_v3, %v2771_v38  ;;  %v2812_v8 = vpop.f32.mrb[39].mxu1 }
 0x143   :  { %v2813_v40 = vadd.f32 %v2812_v8, %v2811_v2 }
 0x144   :  { %v1630_v10 = vadd.f32 %v2810_v1, %v1565_v4  ;;  %v1568_v11 = vadd.f32 %v2773_v6, %v1137_v44 }
 0x146   :  { %v4152_v12 = vadd.f32 %v2813_v40, %v1568_v11  ;;  %v2774_v13 = vpop.f32.mrb[40].mxu0 }
 0x147   :  { %v2814_v15 = vpop.f32.mrb[40].mxu1  ;;  %v2775_v16 = vpop.f32.mrb[41].mxu0 }
 0x148   :  { %v2776_v19 = vadd.f32 %v2775_v16, %v2774_v13  ;;  %v2815_v21 = vpop.f32.mrb[41].mxu1  ;;  %v2777_v9 = vpop.f32.mrb[42].mxu0 }
 0x149   :  { %v2816_v23 = vadd.f32 %v2815_v21, %v2814_v15  ;;  %v2817_v25 = vpop.f32.mrb[42].mxu1  ;;  %v2778_v26 = vpop.f32.mrb[43].mxu0 }
 0x14a   :  { %v1573_v27 = vadd.f32 %v2776_v19, %v1137_v44  ;;  %v2779_v54 = vadd.f32 %v2778_v26, %v2777_v9  ;;  %v2818_v28 = vpop.f32.mrb[43].mxu1 }
 0x14b   :  { %v2819_v29 = vadd.f32 %v2818_v28, %v2817_v25 }
 0x14c   :  { %v4154_v30 = vadd.f32 %v2816_v23, %v1573_v27  ;;  %v1576_v31 = vadd.f32 %v2779_v54, %v1137_v44 }
 0x14e   :  { %v4156_v32 = vadd.f32 %v2819_v29, %v1576_v31  ;;  %v2780_v56 = vpop.f32.mrb[44].mxu0 }
 0x14f   :  { %v2820_v33 = vpop.f32.mrb[44].mxu1  ;;  %v2781_v35 = vpop.f32.mrb[45].mxu0 }
 0x150   :  { %v2821_v36 = vpop.f32.mrb[45].mxu1  ;;  %v2782_v41 = vadd.f32 %v2781_v35, %v2780_v56  ;;  %v2783_v43 = vpop.f32.mrb[46].mxu0 }
 0x151   :  { %v2822_v22 = vadd.f32 %v2821_v36, %v2820_v33  ;;  %v2823_v45 = vpop.f32.mrb[46].mxu1  ;;  %v2784_v14 = vpop.f32.mrb[47].mxu0 }
 0x152   :  { %v2824_v24 = vpop.f32.mrb[47].mxu1  ;;  %v1581_v46 = vadd.f32 %v2782_v41, %v1137_v44  ;;  %v2785_v47 = vadd.f32 %v2784_v14, %v2783_v43 }
 0x153   :  { %v2825_v48 = vadd.f32 %v2824_v24, %v2823_v45 }
 0x154   :  { %v4158_v17 = vadd.f32 %v2822_v22, %v1581_v46  ;;  %v1584_v49 = vadd.f32 %v2785_v47, %v1137_v44 }
 0x156   :  { %v4160_v50 = vadd.f32 %v2825_v48, %v1584_v49  ;;  %v2842_v51 = vpop.f32.mrb[48].mxu0 }
 0x157   :  { %v2882_v52 = vpop.f32.mrb[48].mxu1  ;;  %v2843_v55 = vpop.f32.mrb[49].mxu0 }
 0x158   :  { %v2844_v58 = vadd.f32 %v2843_v55, %v2842_v51  ;;  %v2883_v59 = vpop.f32.mrb[49].mxu1  ;;  %v2845_v60 = vpop.f32.mrb[50].mxu0 }
 0x159   :  { %v2884_v62 = vadd.f32 %v2883_v59, %v2882_v52  ;;  %v2885_v63 = vpop.f32.mrb[50].mxu1  ;;  %v2846_v38 = vpop.f32.mrb[51].mxu0 }
 0x15a   :  { %v1687_v1 = vadd.f32 %v2844_v58, %v1622_v53  ;;  %v2847_v2 = vadd.f32 %v2846_v38, %v2845_v60  ;;  %v2886_v3 = vpop.f32.mrb[51].mxu1 }
 0x15b   :  { %v2887_v4 = vadd.f32 %v2886_v3, %v2885_v63 }
 0x15c   :  { %v4162_v6 = vadd.f32 %v2884_v62, %v1687_v1  ;;  %v1690_v8 = vadd.f32 %v2847_v2, %v4150_v57 }
 0x15e   :  { %v4165_v44 = vadd.f32 %v2887_v4, %v1690_v8  ;;  %v2848_v40 = vpop.f32.mrb[52].mxu0 }
 0x15f   :  { %v2888_v11 = vpop.f32.mrb[52].mxu1  ;;  %v2849_v13 = vpop.f32.mrb[53].mxu0 }
 0x160   :  { %v1786_v15 = vpack.c.bf16 %v4165_v44, %v4162_v6  ;;  %v2850_v16 = vadd.f32 %v2849_v13, %v2848_v40  ;;  %v2889_v19 = vpop.f32.mrb[53].mxu1  ;;  %v2851_v21 = vpop.f32.mrb[54].mxu0 }
 0x161   :  { %v2890_v9 = vadd.f32 %v2889_v19, %v2888_v11  ;;  %v2891_v53 = vpop.f32.mrb[54].mxu1  ;;  %v2852_v23 = vpop.f32.mrb[55].mxu0 }
 0x162   :  { %v1695_v25 = vadd.f32 %v2850_v16, %v1630_v10  ;;  %v2853_v26 = vadd.f32 %v2852_v23, %v2851_v21  ;;  %v2892_v27 = vpop.f32.mrb[55].mxu1  ;;  %2942 = vmatprep.mubr.msk.bf16.mxu0 %vm1910_vm0, %v1786_v15  ;;  %v1809_v13 = vpop.permute.xlu0 %1808 }
 0x163   :  { %v2893_v57 = vadd.f32 %v2892_v27, %v2891_v53  ;;  %v4196_v15 = vpop.permute.xlu1 %1848 }
 0x164   :  { %v4170_v54 = vadd.f32 %v2890_v9, %v1695_v25  ;;  %v1698_v28 = vadd.f32 %v2853_v26, %v4152_v12 }
 0x166   :  { %v4173_v29 = vadd.f32 %v2893_v57, %v1698_v28  ;;  %v2854_v31 = vpop.f32.mrb[56].mxu0 }
 0x167   :  { %v2894_v56 = vpop.f32.mrb[56].mxu1  ;;  %v2855_v33 = vpop.f32.mrb[57].mxu0 }
 0x168   :  { %v1787_v35 = vpack.c.bf16 %v4173_v29, %v4170_v54  ;;  %v2856_v36 = vadd.f32 %v2855_v33, %v2854_v31  ;;  %v2895_v41 = vpop.f32.mrb[57].mxu1  ;;  %v2857_v10 = vpop.f32.mrb[58].mxu0  ;;  %v2050_v31 = vsub.s32 0, %v4029_v5 }
 0x169   :  { %v2896_v22 = vadd.f32 %v2895_v41, %v2894_v56  ;;  %v2897_v43 = vpop.f32.mrb[58].mxu1  ;;  %v2858_v45 = vpop.f32.mrb[59].mxu0 }
 0x16a   :  { %v1703_v14 = vadd.f32 %v2856_v36, %v4154_v30  ;;  %v2859_v24 = vadd.f32 %v2858_v45, %v2857_v10  ;;  %v2898_v46 = vpop.f32.mrb[59].mxu1  ;;  %2943 = vmatmul.mubr.msk.bf16.gmra.mrb[72].mxu0 %vm1910_vm0, %v1787_v35  ;;  %v4202_v33 = vrot.slane %v4035_v7, %v2050_v31 }
 0x16b   :  { %v2899_v12 = vadd.f32 %v2898_v46, %v2897_v43 }
 0x16c   :  { %v4179_v47 = vadd.f32 %v2896_v22, %v1703_v14  ;;  %v1706_v48 = vadd.f32 %v2859_v24, %v4156_v32 }
 0x16e   :  { %v4182_v49 = vadd.f32 %v2899_v12, %v1706_v48  ;;  %v2860_v51 = vpop.f32.mrb[60].mxu0 }
 0x16f   :  { %v2900_v52 = vpop.f32.mrb[60].mxu1  ;;  %v2861_v55 = vpop.f32.mrb[61].mxu0 }
 0x170   :  { %v1788_v58 = vpack.c.bf16 %v4182_v49, %v4179_v47  ;;  %v2862_v59 = vadd.f32 %v2861_v55, %v2860_v51  ;;  %v2901_v60 = vpop.f32.mrb[61].mxu1  ;;  %v2863_v30 = vpop.f32.mrb[62].mxu0 }
 0x171   :  { %v2902_v62 = vadd.f32 %v2901_v60, %v2900_v52  ;;  %v2903_v63 = vpop.f32.mrb[62].mxu1  ;;  %v2864_v38 = vpop.f32.mrb[63].mxu0 }
 0x172   :  { %v1711_v1 = vadd.f32 %v2862_v59, %v4158_v17  ;;  %v2865_v2 = vadd.f32 %v2864_v38, %v2863_v30  ;;  %v2904_v3 = vpop.f32.mrb[63].mxu1  ;;  %2946 = vmatprep.mubr.msk.bf16.mxu0 %vm1910_vm0, %v1788_v58  ;;  %v1814_v17 = vpop.permute.xlu0 %1813 }
 0x173   :  { %v2905_v32 = vadd.f32 %v2904_v3, %v2903_v63 }
 0x174   :  { %v4188_v4 = vadd.f32 %v2902_v62, %v1711_v1  ;;  %v1714_v8 = vadd.f32 %v2865_v2, %v4160_v50 }
 0x176   :  { %v4191_v40 = vadd.f32 %v2905_v32, %v1714_v8 }
 0x178   :  { %v1789_v11 = vpack.c.bf16 %v4191_v40, %v4188_v4 }
 0x17a   :  { %2947 = vmatmul.mubr.msk.bf16.gmra.mrb[76].mxu0 %vm1910_vm0, %v1789_v11  ;;  %v4198_v16 = vpop.permute.xlu1 %1853 }
 0x17b   :  { %v1819_v19 = vpop.permute.xlu0 %1818 }
 0x17e   :  { %v1824_v9 = vpop.permute.xlu1 %1823 }
 0x17f   :  { %v1859_v25 = vpop.permute.xlu0 %1858 }
 0x182   :  { %v1864_v12 = vpop.permute.xlu1 %1863 }
 0x184   :  { %v1829_v56 = vpop.permute.xlu0 %1828 }
 0x186   :  { %v1834_v62 = vpop.permute.xlu1 %1833 }
 0x188   :  { %v4204_v36 = vpop.permute.xlu0 %1868 }
 0x19c   :  { %v1839_v48 = vpop.permute.xlu0 %1838 }
 0x1fd   :  { %v2936_v21 = vpop.f32.mrb[64].mxu0 }
 0x1fe   :  { %v1978_v53 = vadd.f32 %v2936_v21, %v1819_v19  ;;  %v1969_v23 = vpop.f32.mrb[65].mxu0  ;;  %v1874_v21 = vpop.permute.xlu1 %1873 }
 0x1ff   :  { %v1970_v50 = vadd.f32 %v1969_v23, %v1809_v13  ;;  %v2937_v26 = vpop.f32.mrb[66].mxu0 }
 0x200   :  { %3105 = vtanh.f32 %v1978_v53  ;;  %v1981_v27 = vadd.f32 %v2937_v26, %v1824_v9  ;;  %v1972_v57 = vpop.f32.mrb[67].mxu0 }
 0x201   :  { %3107 = vtanh.f32 %v1970_v50  ;;  %v1973_v28 = vadd.f32 %v1972_v57, %v1814_v17 }
 0x202   :  { %3109 = vtanh.f32 %v1981_v27  ;;  %v1844_v31 = vpop.permute.xlu1 %1843 }
 0x203   :  { %3111 = vtanh.f32 %v1973_v28 }
 0x20a   :  { %v3106_v35 = vpop.eup %3105 }
 0x20b   :  { %v3108_v41 = vpop.eup %3107  ;;  %v2054_v10 = vmul.f32 %v3106_v35, %v4202_v33 }
 0x20c   :  { %v3110_v22 = vpop.eup %3109  ;;  %v2052_v43 = vmul.f32 %v3108_v41, %v4202_v33 }
 0x20d   :  { %v3112_v45 = vpop.eup %3111  ;;  %v2074_v14 = vsel %vm1910_vm0, %v2054_v10, 0.0  ;;  %v2055_v7 = vmul.f32 %v3110_v22, %v4202_v33  ;;  %v2940_v52 = vpop.f32.mrb[68].mxu0 }
 0x20e   :  { %2075 = vadd.xlane.f32.xlu1 %v2074_v14  ;;  %v2068_v24 = vsel %vm1910_vm0, %v2052_v43, 0.0  ;;  %v2053_v46 = vmul.f32 %v3112_v45, %v4202_v33  ;;  %v1994_v58 = vadd.f32 %v2940_v52, %v1839_v48  ;;  %v1985_v59 = vpop.f32.mrb[69].mxu0 }
 0x20f   :  { %2069 = vadd.xlane.f32.xlu0 %v2068_v24  ;;  %v2077_v55 = vsel %vm1910_vm0, %v2055_v7, 0.0  ;;  %v1986_v60 = vadd.f32 %v1985_v59, %v1829_v56  ;;  %v2941_v30 = vpop.f32.mrb[70].mxu0 }
 0x210   :  { %v2071_v51 = vsel %vm1910_vm0, %v2053_v46, 0.0  ;;  %3113 = vtanh.f32 %v1994_v58  ;;  %v1988_v63 = vpop.f32.mrb[71].mxu0  ;;  %v1997_v56 = vadd.f32 %v2941_v30, %v1844_v31 }
 0x211   :  { %3115 = vtanh.f32 %v1986_v60  ;;  %v1989_v38 = vadd.f32 %v1988_v63, %v1834_v62 }
 0x212   :  { %2072 = vadd.xlane.f32.xlu1 %v2071_v51 }
 0x213   :  { %2078 = vadd.xlane.f32.xlu0 %v2077_v55  ;;  %3117 = vtanh.f32 %v1989_v38 }
 0x21a   :  { %v3114_v1 = vpop.eup %3113 }
 0x21b   :  { %v3116_v2 = vpop.eup %3115  ;;  %v2058_v3 = vmul.f32 %v3114_v1, %v4202_v33 }
 0x21c   :  { %v2056_v11 = vmul.f32 %v3116_v2, %v4202_v33 }
 0x21d   :  { %v3118_v32 = vpop.eup %3117  ;;  %v2086_v8 = vsel %vm1910_vm0, %v2058_v3, 0.0 }
 0x21e   :  { %2087 = vadd.xlane.f32.xlu1 %v2086_v8  ;;  %v2057_v13 = vmul.f32 %v3118_v32, %v4202_v33  ;;  %v2080_v19 = vsel %vm1910_vm0, %v2056_v11, 0.0 }
 0x220   :  { %v2083_v17 = vsel %vm1910_vm0, %v2057_v13, 0.0 }
 0x221   :  { %2084 = vadd.xlane.f32.xlu0 %v2083_v17 }
 0x222   :  { %2081 = vadd.xlane.f32.xlu1 %v2080_v19 }
 0x23d   :  { %v2944_v9 = vpop.f32.mrb[72].mxu0 }
 0x23e   :  { %v2010_v53 = vadd.f32 %v2944_v9, %v1859_v25  ;;  %v2001_v23 = vpop.f32.mrb[73].mxu0 }
 0x23f   :  { %v2002_v50 = vadd.f32 %v2001_v23, %v4196_v15  ;;  %v2945_v26 = vpop.f32.mrb[74].mxu0  ;;  %v1879_v15 = vpop.permute.xlu0 %1878  ;;  %v3102_v23 = vld [vmem:[%s4329_s2 + $0x428] sm:$0xff]  }
 0x240   :  { %3119 = vtanh.f32 %v2010_v53  ;;  %v2013_v27 = vadd.f32 %v2945_v26, %v1864_v12  ;;  %v2004_v57 = vpop.f32.mrb[75].mxu0  ;;  %v1884_v12 = vpop.permute.xlu1 %1883  ;;  %v3101_v53 = vld [vmem:[%s4329_s2 + $0x420] sm:$0xff]  }
 0x241   :  { %3121 = vtanh.f32 %v2002_v50  ;;  %v2005_v28 = vadd.f32 %v2004_v57, %v4198_v16  ;;  %2950 = vmatprep.subr.bf16.mxu1 %v3101_v53  ;;  %v3104_v50 = vld [vmem:[%s4329_s2 + $0x438] sm:$0xff]  }
 0x242   :  { %3123 = vtanh.f32 %v2013_v27  ;;  %2951 = vmatpush3.bf16.msra.mxu1 %v3101_v53 }
 0x243   :  { %3125 = vtanh.f32 %v2005_v28  ;;  %2952 = vmatprep.subr.bf16.mxu1 %v3102_v23 }
 0x244   :  { %3127 = vtanh.f32 %v1997_v56 }
 0x246   :  { %2953 = vmatpush3.bf16.msra.mxu1 %v3102_v23 }
 0x24a   :  { %v3120_v35 = vpop.eup %3119 }
 0x24b   :  { %v3122_v41 = vpop.eup %3121  ;;  %v2062_v10 = vmul.f32 %v3120_v35, %v4202_v33 }
 0x24c   :  { %v3124_v25 = vpop.eup %3123  ;;  %v2060_v22 = vmul.f32 %v3122_v41, %v4202_v33 }
 0x24d   :  { %v2948_v43 = vpop.f32.mrb[76].mxu0  ;;  %v2098_v45 = vsel %vm1910_vm0, %v2062_v10, 0.0  ;;  %v2063_v46 = vmul.f32 %v3124_v25, %v4202_v33  ;;  %v3126_v7 = vpop.eup %3125 }
 0x24e   :  { %v2026_v14 = vadd.f32 %v2948_v43, %v1879_v15  ;;  %v2017_v24 = vpop.f32.mrb[77].mxu0  ;;  %2099 = vadd.xlane.f32.xlu1 %v2098_v45  ;;  %v2092_v16 = vsel %vm1910_vm0, %v2060_v22, 0.0  ;;  %v2061_v60 = vmul.f32 %v3126_v7, %v4202_v33  ;;  %v3128_v30 = vpop.eup %3127 }
 0x24f   :  { %v2018_v48 = vadd.f32 %v2017_v24, %v4204_v36  ;;  %v2949_v51 = vpop.f32.mrb[78].mxu0  ;;  %2093 = vadd.xlane.f32.xlu0 %v2092_v16  ;;  %v2101_v59 = vsel %vm1910_vm0, %v2063_v46, 0.0  ;;  %v2059_v63 = vmul.f32 %v3128_v30, %v4202_v33 }
 0x250   :  { %3129 = vtanh.f32 %v2026_v14  ;;  %v2029_v52 = vadd.f32 %v2949_v51, %v1884_v12  ;;  %v2020_v55 = vpop.f32.mrb[79].mxu0  ;;  %v2095_v62 = vsel %vm1910_vm0, %v2061_v60, 0.0 }
 0x251   :  { %3131 = vtanh.f32 %v2018_v48  ;;  %v2021_v58 = vadd.f32 %v2020_v55, %v1874_v21  ;;  %v2089_v38 = vsel %vm1910_vm0, %v2059_v63, 0.0 }
 0x252   :  { %3133 = vtanh.f32 %v2029_v52 }
 0x253   :  { %3135 = vtanh.f32 %v2021_v58  ;;  %2102 = vadd.xlane.f32.xlu0 %v2101_v59 }
 0x257   :  { %2096 = vadd.xlane.f32.xlu0 %v2095_v62 }
 0x25a   :  { %v3130_v36 = vpop.eup %3129 }
 0x25b   :  { %v3132_v1 = vpop.eup %3131  ;;  %2090 = vadd.xlane.f32.xlu0 %v2089_v38  ;;  %v2066_v13 = vmul.f32 %v3130_v36, %v4202_v33 }
 0x25c   :  { %v3134_v2 = vpop.eup %3133  ;;  %v2064_v3 = vmul.f32 %v3132_v1, %v4202_v33 }
 0x25d   :  { %v3136_v32 = vpop.eup %3135  ;;  %v2067_v19 = vmul.f32 %v3134_v2, %v4202_v33  ;;  %v2110_v21 = vsel %vm1910_vm0, %v2066_v13, 0.0 }
 0x25e   :  { %v2104_v8 = vsel %vm1910_vm0, %v2064_v3, 0.0  ;;  %v2065_v11 = vmul.f32 %v3136_v32, %v4202_v33  ;;  %v3103_v33 = vld [vmem:[%s4329_s2 + $0x430] sm:$0xff]  }
 0x25f   :  { %2105 = vadd.xlane.f32.xlu1 %v2104_v8  ;;  %v2113_v9 = vsel %vm1910_vm0, %v2067_v19, 0.0  ;;  %2954 = vmatprep.subr.bf16.mxu1 %v3103_v33 }
 0x260   :  { %v2107_v17 = vsel %vm1910_vm0, %v2065_v11, 0.0  ;;  %2955 = vmatpush3.bf16.msra.mxu1 %v3103_v33 }
 0x261   :  { %2108 = vadd.xlane.f32.xlu0 %v2107_v17  ;;  %2956 = vmatprep.subr.bf16.mxu1 %v3104_v50 }
 0x263   :  { %2111 = vadd.xlane.f32.xlu1 %v2110_v21 }
 0x264   :  { %2957 = vmatpush3.bf16.msra.mxu1 %v3104_v50 }
 0x265   :  { %2114 = vadd.xlane.f32.xlu0 %v2113_v9 }
 0x29b   :  { %v2076_v26 = vpop.xlane.xlu1 %2075 }
 0x29c   :  { %v2070_v57 = vpop.xlane.xlu0 %2069 }
 0x29f   :  { %v2073_v27 = vpop.xlane.xlu1 %2072 }
 0x2a0   :  { %v2079_v31 = vpop.xlane.xlu0 %2078 }
 0x2ab   :  { %v4253_v28 = vpop.xlane.xlu1 %2087 }
 0x2ae   :  { %v2085_v35 = vpop.xlane.xlu0 %2084 }
 0x2af   :  { %v2082_v56 = vpop.xlane.xlu1 %2081 }
 0x2db   :  { %v2100_v41 = vpop.xlane.xlu1 %2099 }
 0x2dc   :  { %v2118_v10 = vmax.f32 %v2076_v26, %v2100_v41  ;;  %v2094_v25 = vpop.xlane.xlu0 %2093 }
 0x2dd   :  { %v2116_v22 = vmax.f32 %v2070_v57, %v2094_v25 }
 0x2de   :  { %v2126_v15 = vsub.f32 %v2076_v26, %v2118_v10  ;;  %v2150_v43 = vsub.f32 %v2100_v41, %v2118_v10 }
 0x2df   :  { %v2124_v45 = vsub.f32 %v2070_v57, %v2116_v22  ;;  %v2148_v14 = vsub.f32 %v2094_v25, %v2116_v22 }
 0x2e0   :  { %v2136_v24 = vmul.f32 1.442695, %v2126_v15  ;;  %v2160_v16 = vmul.f32 1.442695, %v2150_v43  ;;  %v2103_v46 = vpop.xlane.xlu0 %2102 }
 0x2e1   :  { %v2132_v7 = vmul.f32 1.442695, %v2124_v45  ;;  %v2156_v12 = vmul.f32 1.442695, %v2148_v14  ;;  %v2119_v48 = vmax.f32 %v2079_v31, %v2103_v46 }
 0x2e2   :  { %3137 = vpow2.f32 %v2136_v24 }
 0x2e3   :  { %3139 = vpow2.f32 %v2160_v16  ;;  %v2127_v51 = vsub.f32 %v2079_v31, %v2119_v48  ;;  %v2151_v52 = vsub.f32 %v2103_v46, %v2119_v48 }
 0x2e4   :  { %3141 = vpow2.f32 %v2132_v7  ;;  %v2097_v55 = vpop.xlane.xlu0 %2096 }
 0x2e5   :  { %3143 = vpow2.f32 %v2156_v12  ;;  %v2138_v58 = vmul.f32 1.442695, %v2127_v51  ;;  %v2162_v59 = vmul.f32 1.442695, %v2151_v52  ;;  %v2117_v60 = vmax.f32 %v2073_v27, %v2097_v55 }
 0x2e7   :  { %3145 = vpow2.f32 %v2138_v58  ;;  %v2125_v30 = vsub.f32 %v2073_v27, %v2117_v60  ;;  %v2149_v62 = vsub.f32 %v2097_v55, %v2117_v60 }
 0x2e8   :  { %3147 = vpow2.f32 %v2162_v59  ;;  %v2091_v38 = vpop.xlane.xlu0 %2090 }
 0x2e9   :  { %v2134_v63 = vmul.f32 1.442695, %v2125_v30  ;;  %v2158_v36 = vmul.f32 1.442695, %v2149_v62 }
 0x2eb   :  { %3149 = vpow2.f32 %v2134_v63 }
 0x2ec   :  { %v3138_v1 = vpop.eup %3137  ;;  %3151 = vpow2.f32 %v2158_v36  ;;  %v2106_v2 = vpop.xlane.xlu1 %2105 }
 0x2ed   :  { %v3140_v3 = vpop.eup %3139  ;;  %v2120_v32 = vmax.f32 %v2082_v56, %v2106_v2 }
 0x2ee   :  { %v3142_v8 = vpop.eup %3141  ;;  %v2174_v11 = vadd.f32 %v3140_v3, %v3138_v1  ;;  %v2109_v13 = vpop.xlane.xlu0 %2108 }
 0x2ef   :  { %v3144_v17 = vpop.eup %3143  ;;  %v2128_v19 = vsub.f32 %v2082_v56, %v2120_v32  ;;  %v2152_v21 = vsub.f32 %v2106_v2, %v2120_v32  ;;  %v2121_v9 = vmax.f32 %v2085_v35, %v2109_v13 }
 0x2f0   :  { %3153 = vrcp.f32 %v2174_v11  ;;  %v2172_v53 = vadd.f32 %v3144_v17, %v3142_v8  ;;  %v2112_v23 = vpop.xlane.xlu1 %2111 }
 0x2f1   :  { %v3146_v33 = vpop.eup %3145  ;;  %v2140_v50 = vmul.f32 1.442695, %v2128_v19  ;;  %v2164_v26 = vmul.f32 1.442695, %v2152_v21  ;;  %v2129_v27 = vsub.f32 %v2085_v35, %v2121_v9  ;;  %v2153_v57 = vsub.f32 %v2109_v13, %v2121_v9 }
 0x2f2   :  { %v3148_v31 = vpop.eup %3147  ;;  %3155 = vrcp.f32 %v2172_v53  ;;  %v2122_v41 = vmax.f32 %v4253_v28, %v2112_v23  ;;  %v2115_v10 = vpop.xlane.xlu0 %2114 }
 0x2f3   :  { %v2175_v25 = vadd.f32 %v3148_v31, %v3146_v33  ;;  %3157 = vpow2.f32 %v2140_v50  ;;  %v2142_v22 = vmul.f32 1.442695, %v2129_v27  ;;  %v2166_v15 = vmul.f32 1.442695, %v2153_v57 }
 0x2f4   :  { %3159 = vpow2.f32 %v2164_v26  ;;  %v2130_v56 = vsub.f32 %v4253_v28, %v2122_v41  ;;  %v2154_v43 = vsub.f32 %v2112_v23, %v2122_v41  ;;  %v2123_v45 = vmax.f32 %v2091_v38, %v2115_v10 }
 0x2f5   :  { %v3150_v14 = vpop.eup %3149  ;;  %3161 = vrcp.f32 %v2175_v25 }
 0x2f6   :  { %v3152_v24 = vpop.eup %3151  ;;  %3163 = vpow2.f32 %v2142_v22  ;;  %v2144_v35 = vmul.f32 1.442695, %v2130_v56  ;;  %v2168_v16 = vmul.f32 1.442695, %v2154_v43  ;;  %v2131_v46 = vsub.f32 %v2091_v38, %v2123_v45 }
 0x2f7   :  { %v2173_v7 = vadd.f32 %v3152_v24, %v3150_v14  ;;  %3165 = vpow2.f32 %v2166_v15  ;;  %v2155_v12 = vsub.f32 %v2115_v10, %v2123_v45 }
 0x2f8   :  { %3167 = vpow2.f32 %v2144_v35  ;;  %v2146_v48 = vmul.f32 1.442695, %v2131_v46 }
 0x2f9   :  { %3169 = vrcp.f32 %v2173_v7  ;;  %v2170_v51 = vmul.f32 1.442695, %v2155_v12 }
 0x2fa   :  { %v3154_v52 = vpop.eup %3153  ;;  %3171 = vpow2.f32 %v2168_v16 }
 0x2fb   :  { %3173 = vpow2.f32 %v2146_v48  ;;  %v2190_v32 = vmul.f32 %v3154_v52, %v3138_v1  ;;  %v2206_v11 = vmul.f32 %v3154_v52, %v3140_v3 }
 0x2fc   :  { %v3156_v28 = vpop.eup %3155  ;;  %3175 = vpow2.f32 %v2170_v51 }
 0x2fd   :  { %v3158_v55 = vpop.eup %3157  ;;  %v2188_v30 = vmul.f32 %v3156_v28, %v3142_v8  ;;  %v2204_v38 = vmul.f32 %v3156_v28, %v3144_v17  ;;  %v2198_v1 = vmul.f32 %v2190_v32, %v4119_v61  ;;  %v2214_v3 = vmul.f32 %v2206_v11, %v4170_v54 }
 0x2fe   :  { %v3160_v58 = vpop.eup %3159 }
 0x2ff   :  { %v3162_v59 = vpop.eup %3161  ;;  %v2176_v60 = vadd.f32 %v3160_v58, %v3158_v55  ;;  %v2196_v23 = vmul.f32 %v2188_v30, %v4095_v37  ;;  %v2222_v25 = vadd.f32 %v2214_v3, %v2198_v1 }
 0x300   :  { %v3164_v62 = vpop.eup %3163  ;;  %v2191_v63 = vmul.f32 %v3162_v59, %v3146_v33  ;;  %v2207_v36 = vmul.f32 %v3162_v59, %v3148_v31  ;;  %v2212_v33 = vmul.f32 %v2204_v38, %v4162_v6 }
 0x301   :  { %v3166_v2 = vpop.eup %3165  ;;  %3177 = vrcp.f32 %v2176_v60  ;;  %v2234_v60 = vsub.s32 3, %v4029_v5 }
 0x302   :  { %v3168_v13 = vpop.eup %3167  ;;  %v2177_v19 = vadd.f32 %v3166_v2, %v3164_v62  ;;  %v2199_v9 = vmul.f32 %v2191_v63, %v4125_v0  ;;  %v2215_v53 = vmul.f32 %v2207_v36, %v4173_v29  ;;  %v2220_v41 = vadd.f32 %v2212_v33, %v2196_v23 }
 0x303   :  { %v3170_v21 = vpop.eup %3169 }
 0x304   :  { %v3172_v50 = vpop.eup %3171  ;;  %3179 = vrcp.f32 %v2177_v19  ;;  %v2189_v8 = vmul.f32 %v3170_v21, %v3150_v14  ;;  %v2205_v26 = vmul.f32 %v3170_v21, %v3152_v24  ;;  %v2223_v29 = vadd.f32 %v2215_v53, %v2199_v9 }
 0x305   :  { %v3174_v17 = vpop.eup %3173  ;;  %v2178_v27 = vadd.f32 %v3172_v50, %v3168_v13 }
 0x306   :  { %v3176_v57 = vpop.eup %3175  ;;  %v2197_v31 = vmul.f32 %v2189_v8, %v4101_v42  ;;  %v2213_v0 = vmul.f32 %v2205_v26, %v4165_v44  ;;  %v2229_v15 = vpack.c.bf16 %v2223_v29, %v2222_v25 }
 0x307   :  { %3181 = vrcp.f32 %v2178_v27  ;;  %v2179_v37 = vadd.f32 %v3176_v57, %v3174_v17 }
 0x308   :  { %v2221_v10 = vadd.f32 %v2213_v0, %v2197_v31 }
 0x309   :  { %3183 = vrcp.f32 %v2179_v37 }
 0x30a   :  { %v2228_v22 = vpack.c.bf16 %v2221_v10, %v2220_v41 }
 0x30b   :  { %v3178_v6 = vpop.eup %3177 }
 0x30c   :  { %2958 = vmatprep.mubr.msk.bf16.mxu1 %vm1910_vm0, %v2228_v22  ;;  %v2192_v61 = vmul.f32 %v3178_v6, %v3158_v55  ;;  %v2208_v54 = vmul.f32 %v3178_v6, %v3160_v58 }
 0x30d   :  { %2959 = vmatmul.mubr.msk.bf16.vlgmr.msra.gmra.mrb[64].mxu1 %vm1910_vm0, %v2229_v15 }
 0x30e   :  { %v3180_v56 = vpop.eup %3179  ;;  %v2200_v44 = vmul.f32 %v2192_v61, %v4131_v18  ;;  %v2216_v45 = vmul.f32 %v2208_v54, %v4179_v47 }
 0x30f   :  { %v2193_v42 = vmul.f32 %v3180_v56, %v3164_v62  ;;  %v2209_v43 = vmul.f32 %v3180_v56, %v3166_v2 }
 0x310   :  { %v2224_v12 = vadd.f32 %v2216_v45, %v2200_v44 }
 0x311   :  { %v3182_v14 = vpop.eup %3181  ;;  %v2201_v24 = vmul.f32 %v2193_v42, %v4134_v20  ;;  %v2217_v35 = vmul.f32 %v2209_v43, %v4182_v49 }
 0x312   :  { %v2194_v16 = vmul.f32 %v3182_v14, %v3168_v13  ;;  %v2210_v46 = vmul.f32 %v3182_v14, %v3172_v50 }
 0x313   :  { %v3184_v7 = vpop.eup %3183  ;;  %v2225_v48 = vadd.f32 %v2217_v35, %v2201_v24 }
 0x314   :  { %v2195_v51 = vmul.f32 %v3184_v7, %v3174_v17  ;;  %v2202_v52 = vmul.f32 %v2194_v16, %v4140_v34  ;;  %v2211_v28 = vmul.f32 %v3184_v7, %v3176_v57  ;;  %v2218_v55 = vmul.f32 %v2210_v46, %v4188_v4  ;;  %v3217_v34 = vld [vmem:[%s4332_s3] sm:$0xff] }
 0x315   :  { %v2230_v18 = vpack.c.bf16 %v2225_v48, %v2224_v12  ;;  %v2235_v30 = vrot.slane %v3217_v34, %v2234_v60 }
 0x316   :  { %v2203_v58 = vmul.f32 %v2195_v51, %v4144_v39  ;;  %v2219_v47 = vmul.f32 %v2211_v28, %v4191_v40  ;;  %v2226_v20 = vadd.f32 %v2218_v55, %v2202_v52 }
 0x317   :  { %2962 = vmatprep.mubr.msk.bf16.mxu1 %vm1910_vm0, %v2230_v18 }
 0x318   :  { %v2227_v49 = vadd.f32 %v2219_v47, %v2203_v58 }
 0x31a   :  { %v2231_v59 = vpack.c.bf16 %v2227_v49, %v2226_v20 }
 0x31c   :  { %2963 = vmatmul.mubr.msk.bf16.gmra.mrb[68].mxu1 %vm1910_vm0, %v2231_v59 }
 0x3e0   :  { %v2960_v4 = vpop.f32.mrb[64].mxu1 }
 0x3e1   :  { %v2315_v62 = vadd.f32 %v2960_v4, %v2235_v30  ;;  %v2306_v63 = vpop.f32.mrb[65].mxu1 }
 0x3e2   :  { %v2961_v39 = vpop.f32.mrb[66].mxu1  ;;  %v2307_v36 = vadd.f32 %v2306_v63, %v2235_v30 }
 0x3e3   :  { %v2318_v40 = vadd.f32 %v2961_v39, %v2235_v30  ;;  %v2309_v38 = vpop.f32.mrb[67].mxu1  ;;  %v2343_v2 = vsel %vm1910_vm0, %v2315_v62, -inf }
 0x3e4   :  { %2344 = vmax.xlane.f32.xlu1 %v2343_v2  ;;  %v2310_v32 = vadd.f32 %v2309_v38, %v2235_v30  ;;  %v2337_v5 = vsel %vm1910_vm0, %v2307_v36, -inf }
 0x3e5   :  { %v2346_v11 = vsel %vm1910_vm0, %v2318_v40, -inf }
 0x3e6   :  { %2347 = vmax.xlane.f32.xlu0 %v2346_v11  ;;  %v2340_v13 = vsel %vm1910_vm0, %v2310_v32, -inf }
 0x3e8   :  { %2338 = vmax.xlane.f32.xlu1 %v2337_v5 }
 0x3ea   :  { %2341 = vmax.xlane.f32.xlu0 %v2340_v13 }
 0x3ef   :  { %v2964_v19 = vpop.f32.mrb[68].mxu1 }
 0x3f0   :  { %v2322_v21 = vpop.f32.mrb[69].mxu1  ;;  %v2331_v50 = vadd.f32 %v2964_v19, %v2235_v30 }
 0x3f1   :  { %v2323_v9 = vadd.f32 %v2322_v21, %v2235_v30  ;;  %v2965_v53 = vpop.f32.mrb[70].mxu1 }
 0x3f2   :  { %v2325_v23 = vpop.f32.mrb[71].mxu1  ;;  %v2334_v33 = vadd.f32 %v2965_v53, %v2235_v30  ;;  %v2355_v1 = vsel %vm1910_vm0, %v2331_v50, -inf }
 0x3f3   :  { %v2326_v8 = vadd.f32 %v2325_v23, %v2235_v30  ;;  %v2349_v26 = vsel %vm1910_vm0, %v2323_v9, -inf }
 0x3f4   :  { %2350 = vmax.xlane.f32.xlu1 %v2349_v26  ;;  %v2358_v3 = vsel %vm1910_vm0, %v2334_v33, -inf }
 0x3f5   :  { %v2352_v17 = vsel %vm1910_vm0, %v2326_v8, -inf }
 0x3f6   :  { %2353 = vmax.xlane.f32.xlu0 %v2352_v17 }
 0x3f8   :  { %2356 = vmax.xlane.f32.xlu1 %v2355_v1 }
 0x3fa   :  { %2359 = vmax.xlane.f32.xlu0 %v2358_v3 }
 0x471   :  { %v2345_v27 = vpop.xlane.xlu1 %2344 }
 0x472   :  { %v2363_v57 = vsub.f32 %v2315_v62, %v2345_v27 }
 0x473   :  { %v2348_v31 = vpop.xlane.xlu0 %2347 }
 0x474   :  { %v2373_v0 = vmul.f32 1.442695, %v2363_v57  ;;  %v2364_v29 = vsub.f32 %v2318_v40, %v2348_v31 }
 0x475   :  { %v2339_v37 = vpop.xlane.xlu1 %2338 }
 0x476   :  { %3185 = vpow2.f32 %v2373_v0  ;;  %v2375_v41 = vmul.f32 1.442695, %v2364_v29  ;;  %v2361_v10 = vsub.f32 %v2307_v36, %v2339_v37 }
 0x477   :  { %v2342_v25 = vpop.xlane.xlu0 %2341 }
 0x478   :  { %3187 = vpow2.f32 %v2375_v41  ;;  %v2369_v22 = vmul.f32 1.442695, %v2361_v10  ;;  %v2362_v6 = vsub.f32 %v2310_v32, %v2342_v25 }
 0x47a   :  { %3189 = vpow2.f32 %v2369_v22  ;;  %v2371_v15 = vmul.f32 1.442695, %v2362_v6 }
 0x47c   :  { %3191 = vpow2.f32 %v2371_v15 }
 0x480   :  { %v3186_v61 = vpop.eup %3185 }
 0x481   :  { %v2351_v54 = vpop.xlane.xlu1 %2350  ;;  %v2391_v56 = vsel %vm1910_vm0, %v3186_v61, 0.0 }
 0x482   :  { %v3188_v42 = vpop.eup %3187  ;;  %v2365_v44 = vsub.f32 %v2323_v9, %v2351_v54  ;;  %2392 = vadd.xlane.f32.xlu1 %v2391_v56 }
 0x483   :  { %v2354_v43 = vpop.xlane.xlu0 %2353  ;;  %v2394_v45 = vsel %vm1910_vm0, %v3188_v42, 0.0 }
 0x484   :  { %v3190_v14 = vpop.eup %3189  ;;  %v2377_v24 = vmul.f32 1.442695, %v2365_v44  ;;  %v2366_v35 = vsub.f32 %v2326_v8, %v2354_v43  ;;  %2395 = vadd.xlane.f32.xlu0 %v2394_v45 }
 0x485   :  { %v2357_v16 = vpop.xlane.xlu1 %2356  ;;  %v2385_v46 = vsel %vm1910_vm0, %v3190_v14, 0.0 }
 0x486   :  { %v3192_v7 = vpop.eup %3191  ;;  %3193 = vpow2.f32 %v2377_v24  ;;  %v2379_v12 = vmul.f32 1.442695, %v2366_v35  ;;  %v2367_v48 = vsub.f32 %v2331_v50, %v2357_v16  ;;  %2386 = vadd.xlane.f32.xlu1 %v2385_v46 }
 0x487   :  { %v2360_v51 = vpop.xlane.xlu0 %2359  ;;  %v2388_v52 = vsel %vm1910_vm0, %v3192_v7, 0.0 }
 0x488   :  { %3195 = vpow2.f32 %v2379_v12  ;;  %v2381_v28 = vmul.f32 1.442695, %v2367_v48  ;;  %v2368_v55 = vsub.f32 %v2334_v33, %v2360_v51  ;;  %2389 = vadd.xlane.f32.xlu0 %v2388_v52 }
 0x48a   :  { %3197 = vpow2.f32 %v2381_v28  ;;  %v2383_v18 = vmul.f32 1.442695, %v2368_v55 }
 0x48c   :  { %3199 = vpow2.f32 %v2383_v18 }
 0x490   :  { %v3194_v58 = vpop.eup %3193 }
 0x491   :  { %v2397_v47 = vsel %vm1910_vm0, %v3194_v58, 0.0 }
 0x492   :  { %v3196_v20 = vpop.eup %3195  ;;  %2398 = vadd.xlane.f32.xlu1 %v2397_v47 }
 0x493   :  { %v2400_v49 = vsel %vm1910_vm0, %v3196_v20, 0.0 }
 0x494   :  { %v3198_v59 = vpop.eup %3197  ;;  %2401 = vadd.xlane.f32.xlu0 %v2400_v49 }
 0x495   :  { %v2403_v60 = vsel %vm1910_vm0, %v3198_v59, 0.0 }
 0x496   :  { %v3200_v34 = vpop.eup %3199  ;;  %2404 = vadd.xlane.f32.xlu1 %v2403_v60 }
 0x497   :  { %v2406_v30 = vsel %vm1910_vm0, %v3200_v34, 0.0 }
 0x498   :  { %2407 = vadd.xlane.f32.xlu0 %v2406_v30 }
 0x50f   :  { %v2393_v4 = vpop.xlane.xlu1 %2392 }
 0x510   :  { %3201 = vrcp.f32 %v2393_v4 }
 0x511   :  { %v2396_v62 = vpop.xlane.xlu0 %2395 }
 0x512   :  { %3203 = vrcp.f32 %v2396_v62 }
 0x513   :  { %v2387_v63 = vpop.xlane.xlu1 %2386 }
 0x514   :  { %3205 = vrcp.f32 %v2387_v63 }
 0x515   :  { %v2390_v39 = vpop.xlane.xlu0 %2389 }
 0x516   :  { %3207 = vrcp.f32 %v2390_v39 }
 0x51a   :  { %v3202_v36 = vpop.eup %3201 }
 0x51b   :  { %v2419_v40 = vmul.f32 %v3202_v36, %v3186_v61 }
 0x51c   :  { %v3204_v38 = vpop.eup %3203 }
 0x51d   :  { %2428 = vst.msk [vmem:[%s4334_s5 + $0x10] sm:$0xff] %vm2425_vm1, %v2419_v40  ;;  %v2420_v2 = vmul.f32 %v3204_v38, %v3188_v42 }
 0x51e   :  { %v3206_v32 = vpop.eup %3205 }
 0x51f   :  { %2429 = vst.msk [vmem:[%s4334_s5 + $0x18] sm:$0xff] %vm2425_vm1, %v2420_v2  ;;  %v2417_v11 = vmul.f32 %v3206_v32, %v3190_v14  ;;  %v2399_v5 = vpop.xlane.xlu1 %2398 }
 0x520   :  { %v3208_v13 = vpop.eup %3207  ;;  %3209 = vrcp.f32 %v2399_v5 }
 0x521   :  { %2426 = vst.msk [vmem:[%s4334_s5] sm:$0xff] %vm2425_vm1, %v2417_v11  ;;  %v2418_v19 = vmul.f32 %v3208_v13, %v3192_v7  ;;  %v2402_v21 = vpop.xlane.xlu0 %2401 }
 0x522   :  { %3211 = vrcp.f32 %v2402_v21 }
 0x523   :  { %2427 = vst.msk [vmem:[%s4334_s5 + $0x8] sm:$0xff] %vm2425_vm1, %v2418_v19  ;;  %v2405_v9 = vpop.xlane.xlu1 %2404 }
 0x524   :  { %3213 = vrcp.f32 %v2405_v9 }
 0x525   :  { %v2408_v53 = vpop.xlane.xlu0 %2407 }
 0x526   :  { %3215 = vrcp.f32 %v2408_v53 }
 0x52a   :  { %v3210_v23 = vpop.eup %3209 }
 0x52b   :  { %v2421_v50 = vmul.f32 %v3210_v23, %v3194_v58 }
 0x52c   :  { %v3212_v8 = vpop.eup %3211 }
 0x52d   :  { %2430 = vst.msk [vmem:[%s4334_s5 + $0x20] sm:$0xff] %vm2425_vm1, %v2421_v50  ;;  %v2422_v26 = vmul.f32 %v3212_v8, %v3196_v20 }
 0x52e   :  { %v3214_v33 = vpop.eup %3213 }
 0x52f   :  { %2431 = vst.msk [vmem:[%s4334_s5 + $0x28] sm:$0xff] %vm2425_vm1, %v2422_v26  ;;  %v2423_v17 = vmul.f32 %v3214_v33, %v3198_v59 }
 0x530   :  { %v3216_v1 = vpop.eup %3215 }
 0x531   :  { %2432 = vst.msk [vmem:[%s4334_s5 + $0x30] sm:$0xff] %vm2425_vm1, %v2423_v17  ;;  %v2424_v3 = vmul.f32 %v3216_v1, %v3200_v34 }
 0x533   :  { %2433 = vst.msk [vmem:[%s4334_s5 + $0x38] sm:$0xff] %vm2425_vm1, %v2424_v3 }

</bundles_post_ra>
